<compile_context>
chip_gen: v6e
topology: v6e:2x2x1
jax: 0.10.0
libtpu: 0.0.40
codegen_flags: <defaults>
</compile_context>

<pallas_src>
import jax
import jax.numpy as jnp
from jax.experimental import pallas as pl
from jax.experimental.pallas import tpu as pltpu

IN_DIM = 2048
H1 = 256
H2 = 128
OUT_DIM = 64          # out_dim argument of SiameseNetwork.__init__
OUT_PAD = 128         # lane-dense padded output width (multiple of 128)
MAX_TILE_B = 512      # f32 x tile stays VMEM-safe on v5e/v6e/v7x default limits


def siamese_mlp_kernel(x_ref, w1_ref, b1_ref, w2_ref, b2_ref, w3_ref, b3_ref, o_ref):
    # x streams in as f32; cast to bf16 in-kernel (free VPU work under DMA-bound regime).
    x = x_ref[...].astype(w1_ref.dtype)
    # fc1 + ReLU  (bf16 x bf16 -> f32 accumulate on MXU)
    h1 = jnp.dot(x, w1_ref[...], preferred_element_type=jnp.float32)
    h1 = jnp.maximum(h1 + b1_ref[...], 0.0)
    # fc2 + ReLU
    h2 = jnp.dot(h1.astype(w2_ref.dtype), w2_ref[...],
                 preferred_element_type=jnp.float32)
    h2 = jnp.maximum(h2 + b2_ref[...], 0.0)
    # fc3 (no activation), lane-dense padded to 128 output columns, stored as bf16
    y = jnp.dot(h2.astype(w3_ref.dtype), w3_ref[...],
                preferred_element_type=jnp.float32) + b3_ref[...]
    o_ref[...] = y.astype(o_ref.dtype)


def _round_up8(n):
    return max(8, pl.cdiv(n, 8) * 8)


def _two_tensorcores_per_chip():
    """True for chips with 2 TensorCores sharing the grid (v4/v5p megacore, v7x)."""
    try:
        kind = jax.devices()[0].device_kind.lower()
    except Exception:
        return False
    return any(t in kind for t in ("v4", "v5p", "v7"))


def _choose_tile_b(batch, two_cores):
    """Generation-aware batch tile.

    Single-TC chips (v5e/v6e): one tile as large as possible (fewest grid steps).
    2-TC chips: >= 2 grid steps, and an even step count, so dimension_semantics
    ('parallel',) splits cleanly across both cores.
    """
    tile = min(_round_up8(batch), MAX_TILE_B)
    if not two_cores:
        return tile
    steps = pl.cdiv(batch, tile)
    if steps < 2:
        # Split the batch into 2 roughly-equal tiles (floor 8 rows).
        tile = _round_up8(pl.cdiv(batch, 2))
    elif steps % 2 == 1:
        # Re-tile so the step count is even (no +1-step imbalance on one core).
        tile = _round_up8(pl.cdiv(batch, steps + 1))
    return tile


def init_params(key):
    """Deterministic f32 init mimicking nn.Linear default (uniform +/- 1/sqrt(fan_in)).
    Weights are stored as (in_features, out_features) — transposed vs. PyTorch."""
    ks = jax.random.split(key, 6)

    def lin(kw, kb, fan_in, fan_out):
        bound = 1.0 / jnp.sqrt(fan_in)
        w = jax.random.uniform(kw, (fan_in, fan_out), jnp.float32, -bound, bound)
        b = jax.random.uniform(kb, (1, fan_out), jnp.float32, -bound, bound)
        return w, b

    w1, b1 = lin(ks[0], ks[1], IN_DIM, H1)
    w2, b2 = lin(ks[2], ks[3], H1, H2)
    w3, b3 = lin(ks[4], ks[5], H2, OUT_DIM)
    return {"w1": w1, "b1": b1, "w2": w2, "b2": b2, "w3": w3, "b3": b3}


def prepare_params(params):
    """One-time conversion: bf16 weights + lane-padded fc3 (64 -> 128 cols).
    Cache the result; per-call astype/pad would re-add ~3 MB of HBM traffic."""
    bf16 = jnp.bfloat16
    pad = ((0, 0), (0, OUT_PAD - OUT_DIM))
    return {
        "w1": params["w1"].astype(bf16),
        "b1": params["b1"].astype(jnp.float32),
        "w2": params["w2"].astype(bf16),
        "b2": params["b2"].astype(jnp.float32),
        "w3": jnp.pad(params["w3"], pad).astype(bf16),
        "b3": jnp.pad(params["b3"], pad).astype(jnp.float32),
    }


def siamese_forward(x, pparams):
    """x: (B, 2048) float32; pparams: output of prepare_params()."""
    w1, b1, w2, b2, w3, b3 = (pparams["w1"], pparams["b1"], pparams["w2"],
                              pparams["b2"], pparams["w3"], pparams["b3"])
    B = x.shape[0]
    tile_b = _choose_tile_b(B, _two_tensorcores_per_chip())
    grid = (pl.cdiv(B, tile_b),)   # no wrapper padding; boundary block is partial

    full = lambda i: (0, 0)        # weights/biases: same full block every grid step

    weight_bytes = 2 * (IN_DIM * H1 + H1 * H2 + H2 * OUT_PAD)   # bf16
    cost = pl.CostEstimate(
        flops=2 * B * (IN_DIM * H1 + H1 * H2 + H2 * OUT_PAD),
        transcendentals=0,
        bytes_accessed=B * IN_DIM * 4 + weight_bytes
                       + 4 * (H1 + H2 + OUT_PAD) + B * OUT_PAD * 2,
    )

    out = pl.pallas_call(
        siamese_mlp_kernel,
        out_shape=jax.ShapeDtypeStruct((B, OUT_PAD), jnp.bfloat16),
        grid_spec=pltpu.PrefetchScalarGridSpec(
            num_scalar_prefetch=0,
            grid=grid,
            in_specs=[
                pl.BlockSpec((tile_b, IN_DIM), lambda i: (i, 0)),  # x tile (f32, streams)
                pl.BlockSpec((IN_DIM, H1), full),                  # w1 (bf16, resident)
                pl.BlockSpec((1, H1), full),                       # b1 (f32)
                pl.BlockSpec((H1, H2), full),                      # w2
                pl.BlockSpec((1, H2), full),                       # b2
                pl.BlockSpec((H2, OUT_PAD), full),                 # w3 (padded)
                pl.BlockSpec((1, OUT_PAD), full),                  # b3 (padded)
            ],
            out_specs=pl.BlockSpec((tile_b, OUT_PAD), lambda i: (i, 0)),
        ),
        compiler_params=pltpu.CompilerParams(
            dimension_semantics=("parallel",),
        ),
        cost_estimate=cost,
    )(x, w1, b1, w2, b2, w3, b3)

    # Slice off the zero-padded lanes and upcast the (tiny) result to f32.
    return out[:, :OUT_DIM].astype(jnp.float32)


def siamese_pair_forward(x1, x2, pparams):
    """Both Siamese branches through ONE pallas_call: shared weight DMA / launch,
    doubled M per call (the model-level fusion from the perf review)."""
    y = siamese_forward(jnp.concatenate([x1, x2], axis=0), pparams)
    n = x1.shape[0]
    return y[:n], y[n:]


def reference_forward(x, params):
    """Pure-JAX reference mirroring the kernel's bf16-operand / f32-accumulate recipe.
    Note: bf16 operands differ from true f32 nn.Linear numerics by ~1e-2 relative."""
    bf16, f32 = jnp.bfloat16, jnp.float32
    w1 = params["w1"].astype(bf16)
    w2 = params["w2"].astype(bf16)
    w3 = params["w3"].astype(bf16)
    h1 = jnp.maximum(jnp.dot(x.astype(bf16), w1, preferred_element_type=f32)
                     + params["b1"], 0.0)
    h2 = jnp.maximum(jnp.dot(h1.astype(bf16), w2, preferred_element_type=f32)
                     + params["b2"], 0.0)
    y = jnp.dot(h2.astype(bf16), w3, preferred_element_type=f32) + params["b3"]
    return y.astype(bf16).astype(f32)   # mirror the bf16 output writeback


if __name__ == "__main__":
    key = jax.random.PRNGKey(0)
    k_x, k_p = jax.random.split(key)

    B = 16  # small demo batch; wrapper handles any B (partial boundary block)
    x = jax.random.normal(k_x, (B, IN_DIM), jnp.float32)
    params = init_params(k_p)
    pparams = prepare_params(params)   # one-time bf16 / lane-padded weight cache

    out = siamese_forward(x, pparams)
    out = jax.block_until_ready(out)

    ref = reference_forward(x, params)
    assert out.shape == (B, OUT_DIM)
    assert jnp.allclose(out, ref, atol=2e-2, rtol=2e-2), "mismatch vs JAX reference"

    # Fused two-branch path (one kernel launch for both Siamese inputs).
    y1, y2 = siamese_pair_forward(x, x, pparams)
    jax.block_until_ready((y1, y2))
    assert jnp.allclose(y1, y2, atol=1e-6, rtol=1e-6)
    assert jnp.allclose(y1, ref, atol=2e-2, rtol=2e-2)

    print("KERNEL_OK")
</pallas_src>

<mosaic_0001>
module attributes {stable_mosaic.version = 11 : i64} {
  func.func @siamese_mlp_kernel(%arg0: i32, %arg1: memref<16x2048xf32, #tpu.memory_space<vmem>>, %arg2: memref<2048x256xbf16, #tpu.memory_space<vmem>>, %arg3: memref<1x256xf32, #tpu.memory_space<vmem>>, %arg4: memref<256x128xbf16, #tpu.memory_space<vmem>>, %arg5: memref<1x128xf32, #tpu.memory_space<vmem>>, %arg6: memref<128x128xbf16, #tpu.memory_space<vmem>>, %arg7: memref<1x128xf32, #tpu.memory_space<vmem>>, %arg8: memref<16x128xbf16, #tpu.memory_space<vmem>>) attributes {dimension_semantics = [#tpu.dimension_semantics<parallel>], iteration_bounds = array<i64: 1>, scalar_prefetch = 0 : i64, scratch_operands = 0 : i64, tpu.core_type = #tpu.core_type<tc>, window_params = [{transform_indices = @transform_0, window_bounds = array<i64: 16, 2048>}, {pipeline_mode = #tpu.pipeline_mode<synchronous>, transform_indices = @transform_1, window_bounds = array<i64: 2048, 256>}, {pipeline_mode = #tpu.pipeline_mode<synchronous>, transform_indices = @transform_2, window_bounds = array<i64: 1, 256>}, {pipeline_mode = #tpu.pipeline_mode<synchronous>, transform_indices = @transform_3, window_bounds = array<i64: 256, 128>}, {pipeline_mode = #tpu.pipeline_mode<synchronous>, transform_indices = @transform_4, window_bounds = array<i64: 1, 128>}, {pipeline_mode = #tpu.pipeline_mode<synchronous>, transform_indices = @transform_5, window_bounds = array<i64: 128, 128>}, {pipeline_mode = #tpu.pipeline_mode<synchronous>, transform_indices = @transform_6, window_bounds = array<i64: 1, 128>}, {transform_indices = @transform_7, window_bounds = array<i64: 16, 128>}]} {
    %c0 = arith.constant 0 : index
    %c0_0 = arith.constant 0 : index
    %0 = vector.load %arg1[%c0, %c0_0] : memref<16x2048xf32, #tpu.memory_space<vmem>>, vector<16x2048xf32>
    %1 = arith.truncf %0 : vector<16x2048xf32> to vector<16x2048xbf16>
    %c0_1 = arith.constant 0 : index
    %c0_2 = arith.constant 0 : index
    %2 = vector.load %arg2[%c0_1, %c0_2] : memref<2048x256xbf16, #tpu.memory_space<vmem>>, vector<2048x256xbf16>
    %cst = arith.constant dense<0.000000e+00> : vector<16x256xf32>
    %3 = tpu.matmul %1, %2, %cst {dimension_numbers = #tpu.dot_dimension_numbers<[1], [0], [0], [1], [0, 0, 1, 1], [], []>} : vector<16x2048xbf16>, vector<2048x256xbf16>, vector<16x256xf32> -> vector<16x256xf32>
    %c0_3 = arith.constant 0 : index
    %c0_4 = arith.constant 0 : index
    %4 = vector.load %arg3[%c0_3, %c0_4] : memref<1x256xf32, #tpu.memory_space<vmem>>, vector<1x256xf32>
    %5 = vector.broadcast %4 : vector<1x256xf32> to vector<16x256xf32>
    %6 = arith.addf %3, %5 : vector<16x256xf32>
    %cst_5 = arith.constant 0.000000e+00 : f32
    %7 = vector.broadcast %cst_5 : f32 to vector<16x256xf32>
    %8 = arith.maximumf %6, %7 : vector<16x256xf32>
    %9 = arith.truncf %8 : vector<16x256xf32> to vector<16x256xbf16>
    %c0_6 = arith.constant 0 : index
    %c0_7 = arith.constant 0 : index
    %10 = vector.load %arg4[%c0_6, %c0_7] : memref<256x128xbf16, #tpu.memory_space<vmem>>, vector<256x128xbf16>
    %cst_8 = arith.constant dense<0.000000e+00> : vector<16x128xf32>
    %11 = tpu.matmul %9, %10, %cst_8 {dimension_numbers = #tpu.dot_dimension_numbers<[1], [0], [0], [1], [0, 0, 1, 1], [], []>} : vector<16x256xbf16>, vector<256x128xbf16>, vector<16x128xf32> -> vector<16x128xf32>
    %c0_9 = arith.constant 0 : index
    %c0_10 = arith.constant 0 : index
    %12 = vector.load %arg5[%c0_9, %c0_10] : memref<1x128xf32, #tpu.memory_space<vmem>>, vector<1x128xf32>
    %13 = vector.broadcast %12 : vector<1x128xf32> to vector<16x128xf32>
    %14 = arith.addf %11, %13 : vector<16x128xf32>
    %cst_11 = arith.constant 0.000000e+00 : f32
    %15 = vector.broadcast %cst_11 : f32 to vector<16x128xf32>
    %16 = arith.maximumf %14, %15 : vector<16x128xf32>
    %17 = arith.truncf %16 : vector<16x128xf32> to vector<16x128xbf16>
    %c0_12 = arith.constant 0 : index
    %c0_13 = arith.constant 0 : index
    %18 = vector.load %arg6[%c0_12, %c0_13] : memref<128x128xbf16, #tpu.memory_space<vmem>>, vector<128x128xbf16>
    %cst_14 = arith.constant dense<0.000000e+00> : vector<16x128xf32>
    %19 = tpu.matmul %17, %18, %cst_14 {dimension_numbers = #tpu.dot_dimension_numbers<[1], [0], [0], [1], [0, 0, 1, 1], [], []>} : vector<16x128xbf16>, vector<128x128xbf16>, vector<16x128xf32> -> vector<16x128xf32>
    %c0_15 = arith.constant 0 : index
    %c0_16 = arith.constant 0 : index
    %20 = vector.load %arg7[%c0_15, %c0_16] : memref<1x128xf32, #tpu.memory_space<vmem>>, vector<1x128xf32>
    %21 = vector.broadcast %20 : vector<1x128xf32> to vector<16x128xf32>
    %22 = arith.addf %19, %21 : vector<16x128xf32>
    %23 = arith.truncf %22 : vector<16x128xf32> to vector<16x128xbf16>
    %c0_17 = arith.constant 0 : index
    %c0_18 = arith.constant 0 : index
    %24 = vector.load %arg8[%c0_17, %c0_18] : memref<16x128xbf16, #tpu.memory_space<vmem>>, vector<16x128xbf16>
    tpu.vector_store %arg8[%c0_17, %c0_18], %23 {strides = array<i32>} : memref<16x128xbf16, #tpu.memory_space<vmem>>, vector<16x128xbf16>,
    return
  }
  func.func @transform_0(%arg0: i32) -> (i32, i32) {
    %c0_i32 = arith.constant 0 : i32
    %c0_i32_0 = arith.constant 0 : i32
    return %arg0, %c0_i32 : i32, i32
  }
  func.func @transform_1(%arg0: i32) -> (i32, i32) {
    %c0_i32 = arith.constant 0 : i32
    %c0_i32_0 = arith.constant 0 : i32
    %c0_i32_1 = arith.constant 0 : i32
    return %c0_i32, %c0_i32_0 : i32, i32
  }
  func.func @transform_2(%arg0: i32) -> (i32, i32) {
    %c0_i32 = arith.constant 0 : i32
    %c0_i32_0 = arith.constant 0 : i32
    %c0_i32_1 = arith.constant 0 : i32
    return %c0_i32, %c0_i32_0 : i32, i32
  }
  func.func @transform_3(%arg0: i32) -> (i32, i32) {
    %c0_i32 = arith.constant 0 : i32
    %c0_i32_0 = arith.constant 0 : i32
    %c0_i32_1 = arith.constant 0 : i32
    return %c0_i32, %c0_i32_0 : i32, i32
  }
  func.func @transform_4(%arg0: i32) -> (i32, i32) {
    %c0_i32 = arith.constant 0 : i32
    %c0_i32_0 = arith.constant 0 : i32
    %c0_i32_1 = arith.constant 0 : i32
    return %c0_i32, %c0_i32_0 : i32, i32
  }
  func.func @transform_5(%arg0: i32) -> (i32, i32) {
    %c0_i32 = arith.constant 0 : i32
    %c0_i32_0 = arith.constant 0 : i32
    %c0_i32_1 = arith.constant 0 : i32
    return %c0_i32, %c0_i32_0 : i32, i32
  }
  func.func @transform_6(%arg0: i32) -> (i32, i32) {
    %c0_i32 = arith.constant 0 : i32
    %c0_i32_0 = arith.constant 0 : i32
    %c0_i32_1 = arith.constant 0 : i32
    return %c0_i32, %c0_i32_0 : i32, i32
  }
  func.func @transform_7(%arg0: i32) -> (i32, i32) {
    %c0_i32 = arith.constant 0 : i32
    %c0_i32_0 = arith.constant 0 : i32
    return %arg0, %c0_i32 : i32, i32
  }
}

</mosaic_0001>

<bundles_post_ra>
// kernel: tpu_custom_call.1
= control target key start
LH: loop header
LB: loop body
LE: loop exit
PB: predicated region body
PF: predicated region fallthrough
CT: control target
= control target key end

     0   :  { %12 = vsyncpa [#allocation3], 0  ;;  %s3313_s0 = inlined_call_operand.hbm [shape: f32[16,2048], index: 0, kind: input, shape index: {}]   ;;  %s3314_s1 = inlined_call_operand.hbm [shape: bf16[2048,256], index: 1, kind: input, shape index: {}]   ;;  %s3315_s2 = inlined_call_operand.vmem [shape: f32[1,256], index: 2, kind: input, shape index: {}]   ;;  %s3316_s3 = inlined_call_operand.hbm [shape: bf16[256,128], index: 3, kind: input, shape index: {}]   ;;  %s3317_s4 = inlined_call_operand.vmem [shape: f32[1,128], index: 4, kind: input, shape index: {}]   ;;  %s3318_s5 = inlined_call_operand.hbm [shape: bf16[128,128], index: 5, kind: input, shape index: {}]   ;;  %s3319_s6 = inlined_call_operand.vmem [shape: f32[1,128], index: 6, kind: input, shape index: {}]   ;;  %s3320_s7 = inlined_call_operand.hbm [shape: bf16[16,128], index: 7, kind: output, shape index: {}]  }
   0x1   :  { %13 = vsyncpa [#allocation6], 0 }
   0x2   :  { %14 = vsyncpa [#allocation9], 0 }
   0x3   :  { %15 = vsyncpa [#allocation4], 0  ;;  %s3219_s24 = smov [#allocation5]  }
   0x4   :  { %s33_s25 = sshll.u32 %s3219_s24, 4  ;;  %s34_s25 = int_to_ptr.vmem [resolvable:$true] %s33_s25 }
   0x5   :  { %s3119_s26 = scalar_lea.vmem %s34_s25, 32768  ;;  %p3124_p1 = scmp.lt.s32.totalorder %s34_s25, %s34_s25 }
   0x6   :  { %p3120_p0 = scmp.ne.s32.totalorder %s34_s25, %s3119_s26  ;;  %p3125_p2 = scmp.lt.s32.totalorder %s3119_s26, %s3119_s26 }
   0x8   :  { %p3126_p3 = por %p3125_p2, %p3124_p1 }
   0xa   :  { %p3127_p4 = pnand %p3126_p3, %p3120_p0 }
   0xc   :  { %3130 = shalt.err (!%p3127_p4)
}
   0xd   :  { %s3220_s27 = smov 128   ;;  %s3221_s28 = smov 8  }
   0xe   :  { %39 = dma.hbm_to_vmem [thread:$0]  %s3314_s1, 32768, %s34_s25, [#allocation6], %s3220_s27, %s3220_s27, %s3221_s28  }
   0xf   :  { %s3222_s8 = smov [#allocation2]  }
  0x10   :  { %s21_s9 = sshll.u32 %s3222_s8, 4  ;;  %s22_s9 = int_to_ptr.vmem [resolvable:$true] %s21_s9 }
  0x11   :  { %s3139_s10 = scalar_lea.vmem %s22_s9, 4096  ;;  %p3144_p6 = scmp.lt.s32.totalorder %s22_s9, %s22_s9 }
  0x12   :  { %p3140_p5 = scmp.ne.s32.totalorder %s22_s9, %s3139_s10  ;;  %p3145_p7 = scmp.lt.s32.totalorder %s3139_s10, %s3139_s10 }
  0x14   :  { %p3146_p8 = por %p3145_p7, %p3144_p6 }
  0x16   :  { %p3147_p9 = pnand %p3146_p8, %p3140_p5 }
  0x18   :  { %3150 = shalt.err (!%p3147_p9)
}
  0x19   :  { %s3223_s11 = smov 2048   ;;  %s3224_s14 = smov [#allocation7]  }
  0x1a   :  { %27 = dma.hbm_to_vmem [thread:$0]  %s3313_s0, 4096, %s22_s9, [#allocation3], %s3223_s11, %s3223_s11, %s3220_s27  }
  0x1b   :  { %s47_s15 = sshll.u32 %s3224_s14, 4  ;;  %s48_s15 = int_to_ptr.vmem [resolvable:$true] %s47_s15 }
  0x1c   :  { %s3159_s16 = scalar_lea.vmem %s48_s15, 2048  ;;  %p3164_p11 = scmp.lt.s32.totalorder %s48_s15, %s48_s15 }
  0x1d   :  { %p3160_p10 = scmp.ne.s32.totalorder %s48_s15, %s3159_s16  ;;  %p3165_p12 = scmp.lt.s32.totalorder %s3159_s16, %s3159_s16 }
  0x1f   :  { %p3166_p13 = por %p3165_p12, %p3164_p11 }
  0x21   :  { %p3167_p0 = pnand %p3166_p13, %p3160_p10 }
  0x23   :  { %3170 = shalt.err (!%p3167_p0)
}
  0x24   :  { %s3225_s1 = smov 64   ;;  %s3226_s17 = smov 4  }
  0x25   :  { %53 = dma.hbm_to_vmem [thread:$0]  %s3316_s3, 2048, %s48_s15, [#allocation6], %s3225_s1, %s3225_s1, %s3226_s17  }
  0x26   :  { %s3227_s0 = smov [#allocation8]  }
  0x27   :  { %s61_s20 = sshll.u32 %s3227_s0, 4  ;;  %s62_s20 = int_to_ptr.vmem [resolvable:$true] %s61_s20 }
  0x28   :  { %s3179_s21 = scalar_lea.vmem %s62_s20, 1024  ;;  %p3184_p2 = scmp.lt.s32.totalorder %s62_s20, %s62_s20 }
  0x29   :  { %p3180_p1 = scmp.ne.s32.totalorder %s62_s20, %s3179_s21  ;;  %p3185_p3 = scmp.lt.s32.totalorder %s3179_s21, %s3179_s21 }
  0x2b   :  { %p3186_p4 = por %p3185_p3, %p3184_p2 }
  0x2d   :  { %p3187_p5 = pnand %p3186_p4, %p3180_p1 }
  0x2f   :  { %3190 = shalt.err (!%p3187_p5)
}
  0x30   :  { %67 = dma.hbm_to_vmem [thread:$0]  %s3318_s5, 1024, %s62_s20, [#allocation9], %s3225_s1, %s3225_s1, %s3226_s17  }
  0x31   :  { %3211 = dma.done.wait [#allocation3], 4096  }
  0x32   :  { %3212 = vsyncadd [#allocation3], 4294963200 }
  0x33   :  { %3213 = dma.done.wait [#allocation6], 34816  }
  0x34   :  { %3214 = vsyncadd [#allocation6], 4294932480 }
  0x35   :  { %3215 = dma.done.wait [#allocation9], 1024  }
  0x36   :  { %3216 = vsyncadd [#allocation9], 4294966272  ;;  %v2703_v0 = vld [vmem:[#allocation5 + $0x74] ss:$8 sps:$4 sm:$0xff]   ;;  %v2707_v2 = vld [vmem:[#allocation5 + $0x70] ss:$8 sps:$4 sm:$0xff]  }
  0x37   :  { %v2705_v1 = vld [vmem:[#allocation5 + $0x174] ss:$8 sps:$4 sm:$0xff]   ;;  %1679 = vmatprep.subr.bf16.mxu0 %v2703_v0  ;;  %v2708_v3 = vld [vmem:[#allocation5 + $0x170] ss:$8 sps:$4 sm:$0xff]   ;;  %v2709_v4 = vld [vmem:[#allocation5 + $0x64] ss:$8 sps:$4 sm:$0xff]  }
  0x38   :  { %1722 = vmatprep.subr.bf16.mxu1 %v2705_v1  ;;  %1680 = vmatpush1.bf16.msra.mxu0 %v2707_v2  ;;  %v2711_v5 = vld [vmem:[#allocation5 + $0x164] ss:$8 sps:$4 sm:$0xff]   ;;  %v2713_v6 = vld [vmem:[#allocation5 + $0x60] ss:$8 sps:$4 sm:$0xff]   ;;  %v2715_v8 = vld [vmem:[#allocation5 + $0x54] ss:$8 sps:$4 sm:$0xff]  }
  0x39   :  { %1723 = vmatpush1.bf16.msra.mxu1 %v2708_v3  ;;  %1681 = vmatprep.subr.bf16.mxu0 %v2709_v4  ;;  %v2714_v7 = vld [vmem:[#allocation5 + $0x160] ss:$8 sps:$4 sm:$0xff]   ;;  %v2717_v9 = vld [vmem:[#allocation5 + $0x154] ss:$8 sps:$4 sm:$0xff]   ;;  %v2719_v10 = vld [vmem:[#allocation5 + $0x50] ss:$8 sps:$4 sm:$0xff]  }
  0x3a   :  { %1724 = vmatprep.subr.bf16.mxu1 %v2711_v5  ;;  %v2720_v11 = vld [vmem:[#allocation5 + $0x150] ss:$8 sps:$4 sm:$0xff]   ;;  %v2721_v12 = vld [vmem:[#allocation5 + $0x44] ss:$8 sps:$4 sm:$0xff]   ;;  %v2725_v14 = vld [vmem:[#allocation5 + $0x40] ss:$8 sps:$4 sm:$0xff]  }
  0x3b   :  { %v2723_v13 = vld [vmem:[#allocation5 + $0x144] ss:$8 sps:$4 sm:$0xff]   ;;  %v2726_v15 = vld [vmem:[#allocation5 + $0x140] ss:$8 sps:$4 sm:$0xff]   ;;  %v2727_v16 = vld [vmem:[#allocation5 + $0x34] ss:$8 sps:$4 sm:$0xff]  }
  0x3c   :  { %1682 = vmatpush1.bf16.msra.mxu0 %v2713_v6  ;;  %v2729_v17 = vld [vmem:[#allocation5 + $0x134] ss:$8 sps:$4 sm:$0xff]   ;;  %v2731_v18 = vld [vmem:[#allocation5 + $0x30] ss:$8 sps:$4 sm:$0xff]   ;;  %v2733_v20 = vld [vmem:[#allocation5 + $0x24] ss:$8 sps:$4 sm:$0xff]  }
  0x3d   :  { %1725 = vmatpush1.bf16.msra.mxu1 %v2714_v7  ;;  %1683 = vmatprep.subr.bf16.mxu0 %v2715_v8  ;;  %v2732_v19 = vld [vmem:[#allocation5 + $0x130] ss:$8 sps:$4 sm:$0xff]   ;;  %v2735_v21 = vld [vmem:[#allocation5 + $0x124] ss:$8 sps:$4 sm:$0xff]   ;;  %v2737_v22 = vld [vmem:[#allocation5 + $0x20] ss:$8 sps:$4 sm:$0xff]  }
  0x3e   :  { %1726 = vmatprep.subr.bf16.mxu1 %v2717_v9  ;;  %v2738_v23 = vld [vmem:[#allocation5 + $0x120] ss:$8 sps:$4 sm:$0xff]   ;;  %v2739_v24 = vld [vmem:[#allocation5 + $0x14] ss:$8 sps:$4 sm:$0xff]   ;;  %v2743_v26 = vld [vmem:[#allocation5 + $0x10] ss:$8 sps:$4 sm:$0xff]  }
  0x3f   :  { %v2741_v25 = vld [vmem:[#allocation5 + $0x114] ss:$8 sps:$4 sm:$0xff]   ;;  %v2744_v27 = vld [vmem:[#allocation5 + $0x110] ss:$8 sps:$4 sm:$0xff]   ;;  %v2745_v28 = vld [vmem:[#allocation5 + $0x4] ss:$8 sps:$4 sm:$0xff]  }
  0x40   :  { %1684 = vmatpush1.bf16.msra.mxu0 %v2719_v10  ;;  %v2747_v29 = vld [vmem:[#allocation5 + $0x104] ss:$8 sps:$4 sm:$0xff]   ;;  %v2749_v30 = vld [vmem:[#allocation5] ss:$8 sps:$4 sm:$0xff]   ;;  %v2751_v32 = vld [vmem:[#allocation5 + $0xf4] ss:$8 sps:$4 sm:$0xff]  }
  0x41   :  { %1727 = vmatpush1.bf16.msra.mxu1 %v2720_v11  ;;  %1685 = vmatprep.subr.bf16.mxu0 %v2721_v12  ;;  %v2750_v31 = vld [vmem:[#allocation5 + $0x100] ss:$8 sps:$4 sm:$0xff]   ;;  %v2753_v33 = vld [vmem:[#allocation5 + $0x1f4] ss:$8 sps:$4 sm:$0xff]   ;;  %v2755_v34 = vld [vmem:[#allocation5 + $0xf0] ss:$8 sps:$4 sm:$0xff]  }
  0x42   :  { %1728 = vmatprep.subr.bf16.mxu1 %v2723_v13  ;;  %v2756_v35 = vld [vmem:[#allocation5 + $0x1f0] ss:$8 sps:$4 sm:$0xff]   ;;  %v2757_v36 = vld [vmem:[#allocation5 + $0xe4] ss:$8 sps:$4 sm:$0xff]   ;;  %v2761_v38 = vld [vmem:[#allocation5 + $0xe0] ss:$8 sps:$4 sm:$0xff]  }
  0x43   :  { %v2759_v37 = vld [vmem:[#allocation5 + $0x1e4] ss:$8 sps:$4 sm:$0xff]   ;;  %v2762_v39 = vld [vmem:[#allocation5 + $0x1e0] ss:$8 sps:$4 sm:$0xff]   ;;  %v2763_v40 = vld [vmem:[#allocation5 + $0xd4] ss:$8 sps:$4 sm:$0xff]  }
  0x44   :  { %1686 = vmatpush1.bf16.msra.mxu0 %v2725_v14  ;;  %v2765_v41 = vld [vmem:[#allocation5 + $0x1d4] ss:$8 sps:$4 sm:$0xff]   ;;  %v2767_v42 = vld [vmem:[#allocation5 + $0xd0] ss:$8 sps:$4 sm:$0xff]   ;;  %v2769_v44 = vld [vmem:[#allocation5 + $0xc4] ss:$8 sps:$4 sm:$0xff]  }
  0x45   :  { %1729 = vmatpush1.bf16.msra.mxu1 %v2726_v15  ;;  %1687 = vmatprep.subr.bf16.mxu0 %v2727_v16  ;;  %v2768_v43 = vld [vmem:[#allocation5 + $0x1d0] ss:$8 sps:$4 sm:$0xff]   ;;  %v2771_v45 = vld [vmem:[#allocation5 + $0x1c4] ss:$8 sps:$4 sm:$0xff]   ;;  %v2773_v50 = vld [vmem:[#allocation5 + $0xc0] ss:$8 sps:$4 sm:$0xff]  }
  0x46   :  { %1730 = vmatprep.subr.bf16.mxu1 %v2729_v17  ;;  %v84_v46 = vld [vmem:[#allocation2 + $0x8] sm:$0xff]  ;;  %v86_v48 = vld [vmem:[#allocation2 + $0x18] sm:$0xff]  ;;  %v83_v6 = vld [vmem:[#allocation2] sm:$0xff]  ;;  %vm3229_vm0 = vmmov 0   ;;  %s3230_s27 = smov [#allocation10]  }
  0x47   :  { %v100_v47 = vld [vmem:[#allocation2 + $0x88] sm:$0xff]  ;;  %v102_v49 = vld [vmem:[#allocation2 + $0x98] sm:$0xff]  ;;  %v99_v7 = vld [vmem:[#allocation2 + $0x80] sm:$0xff]  ;;  %s2335_s28 = sshll.u32 %s3230_s27, 4  ;;  %s2336_s28 = int_to_ptr.vmem [resolvable:$true] %s2335_s28 }
  0x48   :  { %1688 = vmatpush1.bf16.msra.mxu0 %v2731_v18  ;;  %v2774_v51 = vld [vmem:[#allocation5 + $0x1c0] ss:$8 sps:$4 sm:$0xff]   ;;  %v2775_v52 = vld [vmem:[#allocation5 + $0xb4] ss:$8 sps:$4 sm:$0xff]   ;;  %v116_v53 = vpack.c.bf16 %v100_v47, %v84_v46  ;;  %v118_v54 = vpack.c.bf16 %v102_v49, %v86_v48  ;;  %v2779_v56 = vld [vmem:[#allocation5 + $0xb0] ss:$8 sps:$4 sm:$0xff]   ;;  %v115_v12 = vpack.c.bf16 %v99_v7, %v83_v6  ;;  %p3196_p7 = scmp.lt.s32.totalorder %s2336_s28, %s2336_s28 }
  0x49   :  { %1731 = vmatpush1.bf16.msra.mxu1 %v2732_v19  ;;  %1689 = vmatprep.subr.bf16.mxu0 %v2733_v20  ;;  %v2777_v55 = vld [vmem:[#allocation5 + $0x1b4] ss:$8 sps:$4 sm:$0xff]   ;;  %v2780_v57 = vld [vmem:[#allocation5 + $0x1b0] ss:$8 sps:$4 sm:$0xff]   ;;  %v2781_v58 = vld [vmem:[#allocation5 + $0xa4] ss:$8 sps:$4 sm:$0xff]  }
  0x4a   :  { %1732 = vmatprep.subr.bf16.mxu1 %v2735_v21  ;;  %1711 = vmatprep.mubr.bf16.mxu0 %v116_v53  ;;  %v2783_v59 = vld [vmem:[#allocation5 + $0x1a4] ss:$8 sps:$4 sm:$0xff]   ;;  %v2785_v60 = vld [vmem:[#allocation5 + $0xa0] ss:$8 sps:$4 sm:$0xff]   ;;  %v2787_v62 = vld [vmem:[#allocation5 + $0x94] ss:$8 sps:$4 sm:$0xff]  }
  0x4b   :  { %1754 = vmatprep.mubr.bf16.mxu1 %v118_v54  ;;  %v2786_v61 = vld [vmem:[#allocation5 + $0x1a0] ss:$8 sps:$4 sm:$0xff]   ;;  %v2789_v63 = vld [vmem:[#allocation5 + $0x194] ss:$8 sps:$4 sm:$0xff]   ;;  %v2791_v0 = vld [vmem:[#allocation5 + $0x90] ss:$8 sps:$4 sm:$0xff]  }
  0x4c   :  { %1690 = vmatpush1.bf16.msra.mxu0 %v2737_v22  ;;  %v2792_v1 = vld [vmem:[#allocation5 + $0x190] ss:$8 sps:$4 sm:$0xff]   ;;  %v2793_v2 = vld [vmem:[#allocation5 + $0x84] ss:$8 sps:$4 sm:$0xff]   ;;  %v2797_v4 = vld [vmem:[#allocation5 + $0x80] ss:$8 sps:$4 sm:$0xff]  }
  0x4d   :  { %1733 = vmatpush1.bf16.msra.mxu1 %v2738_v23  ;;  %1691 = vmatprep.subr.bf16.mxu0 %v2739_v24  ;;  %v2795_v3 = vld [vmem:[#allocation5 + $0x184] ss:$8 sps:$4 sm:$0xff]   ;;  %v2798_v5 = vld [vmem:[#allocation5 + $0x180] ss:$8 sps:$4 sm:$0xff]   ;;  %v85_v8 = vld [vmem:[#allocation2 + $0x10] sm:$0xff] }
  0x4e   :  { %1734 = vmatprep.subr.bf16.mxu1 %v2741_v25  ;;  %v101_v9 = vld [vmem:[#allocation2 + $0x90] sm:$0xff]  ;;  %v2807_v16 = vld [vmem:[#allocation5 + $0x264] ss:$8 sps:$4 sm:$0xff]   ;;  %v2805_v18 = vld [vmem:[#allocation5 + $0x260] ss:$8 sps:$4 sm:$0xff]  }
  0x4f   :  { %v2801_v10 = vld [vmem:[#allocation5 + $0x274] ss:$8 sps:$4 sm:$0xff]   ;;  %v117_v13 = vpack.c.bf16 %v101_v9, %v85_v8  ;;  %v2799_v14 = vld [vmem:[#allocation5 + $0x270] ss:$8 sps:$4 sm:$0xff]   ;;  %v2810_v17 = vld [vmem:[#allocation5 + $0x364] ss:$8 sps:$4 sm:$0xff]  }
  0x50   :  { %1692 = vmatpush1.bf16.msra.mxu0 %v2743_v26  ;;  %v2804_v11 = vld [vmem:[#allocation5 + $0x374] ss:$8 sps:$4 sm:$0xff]   ;;  %v2802_v15 = vld [vmem:[#allocation5 + $0x370] ss:$8 sps:$4 sm:$0xff]   ;;  %v2808_v19 = vld [vmem:[#allocation5 + $0x360] ss:$8 sps:$4 sm:$0xff]  }
  0x51   :  { %1735 = vmatpush1.bf16.msra.mxu1 %v2744_v27  ;;  %1693 = vmatprep.subr.bf16.mxu0 %v2745_v28  ;;  %v2813_v20 = vld [vmem:[#allocation5 + $0x254] ss:$8 sps:$4 sm:$0xff]   ;;  %v2811_v22 = vld [vmem:[#allocation5 + $0x250] ss:$8 sps:$4 sm:$0xff]   ;;  %v2819_v24 = vld [vmem:[#allocation5 + $0x244] ss:$8 sps:$4 sm:$0xff]  }
  0x52   :  { %1736 = vmatprep.subr.bf16.mxu1 %v2747_v29  ;;  %v2816_v21 = vld [vmem:[#allocation5 + $0x354] ss:$8 sps:$4 sm:$0xff]   ;;  %v2814_v23 = vld [vmem:[#allocation5 + $0x350] ss:$8 sps:$4 sm:$0xff]   ;;  %v2822_v25 = vld [vmem:[#allocation5 + $0x344] ss:$8 sps:$4 sm:$0xff]  }
  0x53   :  { %v2817_v26 = vld [vmem:[#allocation5 + $0x240] ss:$8 sps:$4 sm:$0xff]   ;;  %v2825_v28 = vld [vmem:[#allocation5 + $0x234] ss:$8 sps:$4 sm:$0xff]   ;;  %v2850_v53 = vld [vmem:[#allocation5 + $0x3f0] ss:$8 sps:$4 sm:$0xff]  }
  0x54   :  { %1694 = vmatpush1.bf16.msra.mxu0 %v2749_v30  ;;  %v2820_v27 = vld [vmem:[#allocation5 + $0x340] ss:$8 sps:$4 sm:$0xff]   ;;  %v2828_v29 = vld [vmem:[#allocation5 + $0x334] ss:$8 sps:$4 sm:$0xff]   ;;  %v2823_v30 = vld [vmem:[#allocation5 + $0x230] ss:$8 sps:$4 sm:$0xff]  }
  0x55   :  { %1737 = vmatpush1.bf16.msra.mxu1 %v2750_v31  ;;  %1695 = vmatprep.subr.bf16.mxu0 %v2751_v32  ;;  %v2826_v31 = vld [vmem:[#allocation5 + $0x330] ss:$8 sps:$4 sm:$0xff]   ;;  %v2831_v32 = vld [vmem:[#allocation5 + $0x224] ss:$8 sps:$4 sm:$0xff]   ;;  %v2841_v48 = vld [vmem:[#allocation5 + $0x200] ss:$8 sps:$4 sm:$0xff]  }
  0x56   :  { %1738 = vmatprep.subr.bf16.mxu1 %v2753_v33  ;;  %v2834_v33 = vld [vmem:[#allocation5 + $0x324] ss:$8 sps:$4 sm:$0xff]   ;;  %v106_v46 = vld [vmem:[#allocation2 + $0xb8] sm:$0xff]  ;;  %v2844_v49 = vld [vmem:[#allocation5 + $0x300] ss:$8 sps:$4 sm:$0xff]  }
  0x57   :  { %v2855_v54 = vld [vmem:[#allocation5 + $0x2e4] ss:$8 sps:$4 sm:$0xff]   ;;  %v2877_v8 = vld [vmem:[#allocation5 + $0x2a0] ss:$8 sps:$4 sm:$0xff]  }
  0x58   :  { %1696 = vmatpush2.bf16.msra.mxu0 %v2755_v34  ;;  %v2829_v34 = vld [vmem:[#allocation5 + $0x220] ss:$8 sps:$4 sm:$0xff]   ;;  %v2879_v6 = vld [vmem:[#allocation5 + $0x2a4] ss:$8 sps:$4 sm:$0xff]  }
  0x59   :  { %1739 = vmatpush2.bf16.msra.mxu1 %v2756_v35  ;;  %1697 = vmatprep.subr.bf16.mxu0 %v2757_v36  ;;  %v2832_v35 = vld [vmem:[#allocation5 + $0x320] ss:$8 sps:$4 sm:$0xff]   ;;  %v2837_v36 = vld [vmem:[#allocation5 + $0x214] ss:$8 sps:$4 sm:$0xff]   ;;  %v2882_v7 = vld [vmem:[#allocation5 + $0x3a4] ss:$8 sps:$4 sm:$0xff]  }
  0x5a   :  { %1740 = vmatprep.subr.bf16.mxu1 %v2759_v37  ;;  %v2840_v37 = vld [vmem:[#allocation5 + $0x314] ss:$8 sps:$4 sm:$0xff]   ;;  %v2880_v9 = vld [vmem:[#allocation5 + $0x3a0] ss:$8 sps:$4 sm:$0xff]  }
  0x5c   :  { %1698 = vmatpush2.bf16.msra.mxu0 %v2761_v38  ;;  %v2835_v38 = vld [vmem:[#allocation5 + $0x210] ss:$8 sps:$4 sm:$0xff]  }
  0x5d   :  { %1741 = vmatpush2.bf16.msra.mxu1 %v2762_v39  ;;  %1699 = vmatprep.subr.bf16.mxu0 %v2763_v40  ;;  %v2838_v39 = vld [vmem:[#allocation5 + $0x310] ss:$8 sps:$4 sm:$0xff]   ;;  %v88_v40 = vld [vmem:[#allocation2 + $0x28] sm:$0xff] }
  0x5e   :  { %1742 = vmatprep.subr.bf16.mxu1 %v2765_v41  ;;  %v104_v41 = vld [vmem:[#allocation2 + $0xa8] sm:$0xff] }
  0x60   :  { %1700 = vmatpush2.bf16.msra.mxu0 %v2767_v42  ;;  %v90_v42 = vld [vmem:[#allocation2 + $0x38] sm:$0xff] }
  0x61   :  { %1743 = vmatpush2.bf16.msra.mxu1 %v2768_v43  ;;  %1701 = vmatprep.subr.bf16.mxu0 %v2769_v44  ;;  %v2843_v43 = vld [vmem:[#allocation5 + $0x204] ss:$8 sps:$4 sm:$0xff]   ;;  %v122_v47 = vpack.c.bf16 %v106_v46, %v90_v42  ;;  %v2921_v46 = vld [vmem:[#allocation5 + $0x434] ss:$8 sps:$4 sm:$0xff]  }
  0x62   :  { %1744 = vmatprep.subr.bf16.mxu1 %v2771_v45  ;;  %v2846_v44 = vld [vmem:[#allocation5 + $0x304] ss:$8 sps:$4 sm:$0xff]   ;;  %v120_v45 = vpack.c.bf16 %v104_v41, %v88_v40  ;;  %v2910_v40 = vld [vmem:[#allocation5 + $0x550] ss:$8 sps:$4 sm:$0xff]  }
  0x63   :  { %v2915_v42 = vld [vmem:[#allocation5 + $0x444] ss:$8 sps:$4 sm:$0xff]  }
  0x64   :  { %1702 = vmatpush2.bf16.msra.mxu0 %v2773_v50  ;;  %v2849_v50 = vld [vmem:[#allocation5 + $0x2f4] ss:$8 sps:$4 sm:$0xff]  }
  0x65   :  { %1745 = vmatpush2.bf16.msra.mxu1 %v2774_v51  ;;  %1703 = vmatprep.subr.bf16.mxu0 %v2775_v52  ;;  %v2852_v51 = vld [vmem:[#allocation5 + $0x3f4] ss:$8 sps:$4 sm:$0xff]   ;;  %v2847_v52 = vld [vmem:[#allocation5 + $0x2f0] ss:$8 sps:$4 sm:$0xff]  }
  0x66   :  { %1746 = vmatprep.subr.bf16.mxu1 %v2777_v55  ;;  %v2858_v55 = vld [vmem:[#allocation5 + $0x3e4] ss:$8 sps:$4 sm:$0xff]  }
  0x68   :  { %1704 = vmatpush2.bf16.msra.mxu0 %v2779_v56  ;;  %v2853_v56 = vld [vmem:[#allocation5 + $0x2e0] ss:$8 sps:$4 sm:$0xff]  }
  0x69   :  { %1747 = vmatpush2.bf16.msra.mxu1 %v2780_v57  ;;  %1705 = vmatprep.subr.bf16.mxu0 %v2781_v58  ;;  %v2856_v57 = vld [vmem:[#allocation5 + $0x3e0] ss:$8 sps:$4 sm:$0xff]   ;;  %v2861_v58 = vld [vmem:[#allocation5 + $0x2d4] ss:$8 sps:$4 sm:$0xff]  }
  0x6a   :  { %1748 = vmatprep.subr.bf16.mxu1 %v2783_v59  ;;  %v2864_v59 = vld [vmem:[#allocation5 + $0x3d4] ss:$8 sps:$4 sm:$0xff]  }
  0x6c   :  { %1706 = vmatpush2.bf16.msra.mxu0 %v2785_v60  ;;  %v2859_v60 = vld [vmem:[#allocation5 + $0x2d0] ss:$8 sps:$4 sm:$0xff]  }
  0x6d   :  { %1749 = vmatpush2.bf16.msra.mxu1 %v2786_v61  ;;  %1707 = vmatprep.subr.bf16.mxu0 %v2787_v62  ;;  %v2862_v61 = vld [vmem:[#allocation5 + $0x3d0] ss:$8 sps:$4 sm:$0xff]   ;;  %v2867_v62 = vld [vmem:[#allocation5 + $0x2c4] ss:$8 sps:$4 sm:$0xff]  }
  0x6e   :  { %1750 = vmatprep.subr.bf16.mxu1 %v2789_v63  ;;  %v2870_v63 = vld [vmem:[#allocation5 + $0x3c4] ss:$8 sps:$4 sm:$0xff]  }
  0x70   :  { %1708 = vmatpush2.bf16.msra.mxu0 %v2791_v0  ;;  %v2865_v0 = vld [vmem:[#allocation5 + $0x2c0] ss:$8 sps:$4 sm:$0xff]  }
  0x71   :  { %1751 = vmatpush2.bf16.msra.mxu1 %v2792_v1  ;;  %1709 = vmatprep.subr.bf16.mxu0 %v2793_v2  ;;  %v2868_v1 = vld [vmem:[#allocation5 + $0x3c0] ss:$8 sps:$4 sm:$0xff]   ;;  %v2873_v2 = vld [vmem:[#allocation5 + $0x2b4] ss:$8 sps:$4 sm:$0xff]  }
  0x72   :  { %1752 = vmatprep.subr.bf16.mxu1 %v2795_v3  ;;  %v2876_v3 = vld [vmem:[#allocation5 + $0x3b4] ss:$8 sps:$4 sm:$0xff]  }
  0x74   :  { %1710 = vmatpush2.bf16.msra.mxu0 %v2797_v4  ;;  %v2871_v4 = vld [vmem:[#allocation5 + $0x2b0] ss:$8 sps:$4 sm:$0xff]  }
  0x75   :  { %1753 = vmatpush2.bf16.msra.mxu1 %v2798_v5  ;;  %1765 = vmatprep.subr.bf16.mxu0 %v2801_v10  ;;  %v2874_v5 = vld [vmem:[#allocation5 + $0x3b0] ss:$8 sps:$4 sm:$0xff]   ;;  %v2885_v10 = vld [vmem:[#allocation5 + $0x294] ss:$8 sps:$4 sm:$0xff]  }
  0x76   :  { %1808 = vmatprep.subr.bf16.mxu1 %v2804_v11  ;;  %v2888_v11 = vld [vmem:[#allocation5 + $0x394] ss:$8 sps:$4 sm:$0xff]  }
  0x77   :  { %1712 = vmatmul.mubr.bf16.vlgmr.msra.gmra.mxu0 %v115_v12  ;;  %v2883_v12 = vld [vmem:[#allocation5 + $0x290] ss:$8 sps:$4 sm:$0xff]  }
  0x78   :  { %1755 = vmatmul.mubr.bf16.vlgmr.msra.gmra.mxu1 %v117_v13  ;;  %1766 = vmatpush1.bf16.msra.mxu0 %v2799_v14  ;;  %v2886_v13 = vld [vmem:[#allocation5 + $0x390] ss:$8 sps:$4 sm:$0xff]   ;;  %v2891_v14 = vld [vmem:[#allocation5 + $0x284] ss:$8 sps:$4 sm:$0xff]  }
  0x79   :  { %1809 = vmatpush1.bf16.msra.mxu1 %v2802_v15  ;;  %1767 = vmatprep.subr.bf16.mxu0 %v2807_v16  ;;  %v2894_v15 = vld [vmem:[#allocation5 + $0x384] ss:$8 sps:$4 sm:$0xff]   ;;  %v2889_v16 = vld [vmem:[#allocation5 + $0x280] ss:$8 sps:$4 sm:$0xff]  }
  0x7a   :  { %1810 = vmatprep.subr.bf16.mxu1 %v2810_v17  ;;  %1797 = vmatprep.mubr.bf16.mxu0 %v120_v45  ;;  %v2892_v17 = vld [vmem:[#allocation5 + $0x380] ss:$8 sps:$4 sm:$0xff]  }
  0x7b   :  { %1840 = vmatprep.mubr.bf16.mxu1 %v122_v47  ;;  %v2916_v45 = vld [vmem:[#allocation5 + $0x540] ss:$8 sps:$4 sm:$0xff]   ;;  %v2924_v47 = vld [vmem:[#allocation5 + $0x534] ss:$8 sps:$4 sm:$0xff]  }
  0x7c   :  { %1768 = vmatpush1.bf16.msra.mxu0 %v2805_v18  ;;  %v87_v18 = vld [vmem:[#allocation2 + $0x20] sm:$0xff] }
  0x7d   :  { %1811 = vmatpush1.bf16.msra.mxu1 %v2808_v19  ;;  %1769 = vmatprep.subr.bf16.mxu0 %v2813_v20  ;;  %v103_v19 = vld [vmem:[#allocation2 + $0xa0] sm:$0xff]  ;;  %v89_v20 = vld [vmem:[#allocation2 + $0x30] sm:$0xff] }
  0x7e   :  { %1812 = vmatprep.subr.bf16.mxu1 %v2816_v21  ;;  %v105_v21 = vld [vmem:[#allocation2 + $0xb0] sm:$0xff] }
  0x80   :  { %1770 = vmatpush1.bf16.msra.mxu0 %v2811_v22  ;;  %v2897_v22 = vld [vmem:[#allocation5 + $0x474] ss:$8 sps:$4 sm:$0xff]  }
  0x81   :  { %1813 = vmatpush1.bf16.msra.mxu1 %v2814_v23  ;;  %1771 = vmatprep.subr.bf16.mxu0 %v2819_v24  ;;  %v2900_v23 = vld [vmem:[#allocation5 + $0x574] ss:$8 sps:$4 sm:$0xff]   ;;  %v119_v24 = vpack.c.bf16 %v103_v19, %v87_v18  ;;  %v2975_v18 = vld [vmem:[#allocation5 + $0x4a4] ss:$8 sps:$4 sm:$0xff]  }
  0x82   :  { %1814 = vmatprep.subr.bf16.mxu1 %v2822_v25  ;;  %v121_v25 = vpack.c.bf16 %v105_v21, %v89_v20  ;;  %v2978_v19 = vld [vmem:[#allocation5 + $0x5a4] ss:$8 sps:$4 sm:$0xff]   ;;  %v2973_v20 = vld [vmem:[#allocation5 + $0x4a0] ss:$8 sps:$4 sm:$0xff]  }
  0x83   :  { %v2976_v21 = vld [vmem:[#allocation5 + $0x5a0] ss:$8 sps:$4 sm:$0xff]  }
  0x84   :  { %1772 = vmatpush1.bf16.msra.mxu0 %v2817_v26  ;;  %v2895_v26 = vld [vmem:[#allocation5 + $0x470] ss:$8 sps:$4 sm:$0xff]  }
  0x85   :  { %1815 = vmatpush1.bf16.msra.mxu1 %v2820_v27  ;;  %1773 = vmatprep.subr.bf16.mxu0 %v2825_v28  ;;  %v2898_v27 = vld [vmem:[#allocation5 + $0x570] ss:$8 sps:$4 sm:$0xff]   ;;  %v2903_v28 = vld [vmem:[#allocation5 + $0x464] ss:$8 sps:$4 sm:$0xff]  }
  0x86   :  { %1816 = vmatprep.subr.bf16.mxu1 %v2828_v29  ;;  %v2906_v29 = vld [vmem:[#allocation5 + $0x564] ss:$8 sps:$4 sm:$0xff]  }
  0x88   :  { %1774 = vmatpush1.bf16.msra.mxu0 %v2823_v30  ;;  %v2901_v30 = vld [vmem:[#allocation5 + $0x460] ss:$8 sps:$4 sm:$0xff]  }
  0x89   :  { %1817 = vmatpush1.bf16.msra.mxu1 %v2826_v31  ;;  %1775 = vmatprep.subr.bf16.mxu0 %v2831_v32  ;;  %v2904_v31 = vld [vmem:[#allocation5 + $0x560] ss:$8 sps:$4 sm:$0xff]   ;;  %v2909_v32 = vld [vmem:[#allocation5 + $0x454] ss:$8 sps:$4 sm:$0xff]  }
  0x8a   :  { %1818 = vmatprep.subr.bf16.mxu1 %v2834_v33  ;;  %v2912_v33 = vld [vmem:[#allocation5 + $0x554] ss:$8 sps:$4 sm:$0xff]  }
  0x8c   :  { %1776 = vmatpush1.bf16.msra.mxu0 %v2829_v34  ;;  %v92_v34 = vld [vmem:[#allocation2 + $0x48] sm:$0xff] }
  0x8d   :  { %1819 = vmatpush1.bf16.msra.mxu1 %v2832_v35  ;;  %1777 = vmatprep.subr.bf16.mxu0 %v2837_v36  ;;  %v108_v35 = vld [vmem:[#allocation2 + $0xc8] sm:$0xff] }
  0x8e   :  { %1820 = vmatprep.subr.bf16.mxu1 %v2840_v37  ;;  %v124_v36 = vpack.c.bf16 %v108_v35, %v92_v34  ;;  %v94_v37 = vld [vmem:[#allocation2 + $0x58] sm:$0xff] }
  0x8f   :  { %v2993_v34 = vld [vmem:[#allocation5 + $0x674] ss:$8 sps:$4 sm:$0xff]  }
  0x90   :  { %1778 = vmatpush1.bf16.msra.mxu0 %v2835_v38  ;;  %v110_v38 = vld [vmem:[#allocation2 + $0xd8] sm:$0xff] }
  0x91   :  { %1821 = vmatpush1.bf16.msra.mxu1 %v2838_v39  ;;  %1779 = vmatprep.subr.bf16.mxu0 %v2843_v43  ;;  %v2907_v39 = vld [vmem:[#allocation5 + $0x450] ss:$8 sps:$4 sm:$0xff]   ;;  %v126_v41 = vpack.c.bf16 %v110_v38, %v94_v37  ;;  %v2918_v43 = vld [vmem:[#allocation5 + $0x544] ss:$8 sps:$4 sm:$0xff]   ;;  %v2996_v35 = vld [vmem:[#allocation5 + $0x774] ss:$8 sps:$4 sm:$0xff]  }
  0x92   :  { %1822 = vmatprep.subr.bf16.mxu1 %v2846_v44  ;;  %v2913_v44 = vld [vmem:[#allocation5 + $0x440] ss:$8 sps:$4 sm:$0xff]   ;;  %v98_v38 = vld [vmem:[#allocation2 + $0x78] sm:$0xff] }
  0x93   :  { %v112_v37 = vld [vmem:[#allocation2 + $0xe8] sm:$0xff] }
  0x94   :  { %1780 = vmatpush1.bf16.msra.mxu0 %v2841_v48  ;;  %v2919_v48 = vld [vmem:[#allocation5 + $0x430] ss:$8 sps:$4 sm:$0xff]  }
  0x95   :  { %1823 = vmatpush1.bf16.msra.mxu1 %v2844_v49  ;;  %1781 = vmatprep.subr.bf16.mxu0 %v2849_v50  ;;  %v2922_v49 = vld [vmem:[#allocation5 + $0x530] ss:$8 sps:$4 sm:$0xff]   ;;  %v2927_v50 = vld [vmem:[#allocation5 + $0x424] ss:$8 sps:$4 sm:$0xff]  }
  0x96   :  { %1824 = vmatprep.subr.bf16.mxu1 %v2852_v51  ;;  %v2930_v51 = vld [vmem:[#allocation5 + $0x524] ss:$8 sps:$4 sm:$0xff]  }
  0x98   :  { %1782 = vmatpush2.bf16.msra.mxu0 %v2847_v52  ;;  %v2925_v52 = vld [vmem:[#allocation5 + $0x420] ss:$8 sps:$4 sm:$0xff]  }
  0x99   :  { %1825 = vmatpush2.bf16.msra.mxu1 %v2850_v53  ;;  %1783 = vmatprep.subr.bf16.mxu0 %v2855_v54  ;;  %v2928_v53 = vld [vmem:[#allocation5 + $0x520] ss:$8 sps:$4 sm:$0xff]   ;;  %v2933_v54 = vld [vmem:[#allocation5 + $0x414] ss:$8 sps:$4 sm:$0xff]  }
  0x9a   :  { %1826 = vmatprep.subr.bf16.mxu1 %v2858_v55  ;;  %v2936_v55 = vld [vmem:[#allocation5 + $0x514] ss:$8 sps:$4 sm:$0xff]  }
  0x9c   :  { %1784 = vmatpush2.bf16.msra.mxu0 %v2853_v56  ;;  %v2931_v56 = vld [vmem:[#allocation5 + $0x410] ss:$8 sps:$4 sm:$0xff]  }
  0x9d   :  { %1827 = vmatpush2.bf16.msra.mxu1 %v2856_v57  ;;  %1785 = vmatprep.subr.bf16.mxu0 %v2861_v58  ;;  %v2934_v57 = vld [vmem:[#allocation5 + $0x510] ss:$8 sps:$4 sm:$0xff]   ;;  %v2939_v58 = vld [vmem:[#allocation5 + $0x404] ss:$8 sps:$4 sm:$0xff]  }
  0x9e   :  { %1828 = vmatprep.subr.bf16.mxu1 %v2864_v59  ;;  %v2942_v59 = vld [vmem:[#allocation5 + $0x504] ss:$8 sps:$4 sm:$0xff]  }
  0xa0   :  { %1786 = vmatpush2.bf16.msra.mxu0 %v2859_v60  ;;  %v2937_v60 = vld [vmem:[#allocation5 + $0x400] ss:$8 sps:$4 sm:$0xff]  }
  0xa1   :  { %1829 = vmatpush2.bf16.msra.mxu1 %v2862_v61  ;;  %1787 = vmatprep.subr.bf16.mxu0 %v2867_v62  ;;  %v2940_v61 = vld [vmem:[#allocation5 + $0x500] ss:$8 sps:$4 sm:$0xff]   ;;  %v2945_v62 = vld [vmem:[#allocation5 + $0x4f4] ss:$8 sps:$4 sm:$0xff]  }
  0xa2   :  { %1830 = vmatprep.subr.bf16.mxu1 %v2870_v63  ;;  %v2948_v63 = vld [vmem:[#allocation5 + $0x5f4] ss:$8 sps:$4 sm:$0xff]  }
  0xa4   :  { %1788 = vmatpush2.bf16.msra.mxu0 %v2865_v0  ;;  %v2943_v0 = vld [vmem:[#allocation5 + $0x4f0] ss:$8 sps:$4 sm:$0xff]  }
  0xa5   :  { %1831 = vmatpush2.bf16.msra.mxu1 %v2868_v1  ;;  %1789 = vmatprep.subr.bf16.mxu0 %v2873_v2  ;;  %v2946_v1 = vld [vmem:[#allocation5 + $0x5f0] ss:$8 sps:$4 sm:$0xff]   ;;  %v2951_v2 = vld [vmem:[#allocation5 + $0x4e4] ss:$8 sps:$4 sm:$0xff]  }
  0xa6   :  { %1832 = vmatprep.subr.bf16.mxu1 %v2876_v3  ;;  %v2954_v3 = vld [vmem:[#allocation5 + $0x5e4] ss:$8 sps:$4 sm:$0xff]  }
  0xa8   :  { %1790 = vmatpush2.bf16.msra.mxu0 %v2871_v4  ;;  %v2949_v4 = vld [vmem:[#allocation5 + $0x4e0] ss:$8 sps:$4 sm:$0xff]  }
  0xa9   :  { %1833 = vmatpush2.bf16.msra.mxu1 %v2874_v5  ;;  %1791 = vmatprep.subr.bf16.mxu0 %v2879_v6  ;;  %v2952_v5 = vld [vmem:[#allocation5 + $0x5e0] ss:$8 sps:$4 sm:$0xff]   ;;  %v2957_v6 = vld [vmem:[#allocation5 + $0x4d4] ss:$8 sps:$4 sm:$0xff]  }
  0xaa   :  { %1834 = vmatprep.subr.bf16.mxu1 %v2882_v7  ;;  %v2960_v7 = vld [vmem:[#allocation5 + $0x5d4] ss:$8 sps:$4 sm:$0xff]  }
  0xac   :  { %1792 = vmatpush2.bf16.msra.mxu0 %v2877_v8  ;;  %v2955_v8 = vld [vmem:[#allocation5 + $0x4d0] ss:$8 sps:$4 sm:$0xff]  }
  0xad   :  { %1835 = vmatpush2.bf16.msra.mxu1 %v2880_v9  ;;  %1793 = vmatprep.subr.bf16.mxu0 %v2885_v10  ;;  %v2958_v9 = vld [vmem:[#allocation5 + $0x5d0] ss:$8 sps:$4 sm:$0xff]   ;;  %v2963_v10 = vld [vmem:[#allocation5 + $0x4c4] ss:$8 sps:$4 sm:$0xff]  }
  0xae   :  { %1836 = vmatprep.subr.bf16.mxu1 %v2888_v11  ;;  %v2966_v11 = vld [vmem:[#allocation5 + $0x5c4] ss:$8 sps:$4 sm:$0xff]  }
  0xb0   :  { %1794 = vmatpush2.bf16.msra.mxu0 %v2883_v12  ;;  %v2961_v12 = vld [vmem:[#allocation5 + $0x4c0] ss:$8 sps:$4 sm:$0xff]  }
  0xb1   :  { %1837 = vmatpush2.bf16.msra.mxu1 %v2886_v13  ;;  %1795 = vmatprep.subr.bf16.mxu0 %v2891_v14  ;;  %v2964_v13 = vld [vmem:[#allocation5 + $0x5c0] ss:$8 sps:$4 sm:$0xff]   ;;  %v2969_v14 = vld [vmem:[#allocation5 + $0x4b4] ss:$8 sps:$4 sm:$0xff]  }
  0xb2   :  { %1838 = vmatprep.subr.bf16.mxu1 %v2894_v15  ;;  %v2972_v15 = vld [vmem:[#allocation5 + $0x5b4] ss:$8 sps:$4 sm:$0xff]  }
  0xb4   :  { %1796 = vmatpush2.bf16.msra.mxu0 %v2889_v16  ;;  %v2967_v16 = vld [vmem:[#allocation5 + $0x4b0] ss:$8 sps:$4 sm:$0xff]  }
  0xb5   :  { %1839 = vmatpush2.bf16.msra.mxu1 %v2892_v17  ;;  %1851 = vmatprep.subr.bf16.mxu0 %v2897_v22  ;;  %v2970_v17 = vld [vmem:[#allocation5 + $0x5b0] ss:$8 sps:$4 sm:$0xff]   ;;  %v2981_v22 = vld [vmem:[#allocation5 + $0x494] ss:$8 sps:$4 sm:$0xff]  }
  0xb6   :  { %1894 = vmatprep.subr.bf16.mxu1 %v2900_v23  ;;  %v2984_v23 = vld [vmem:[#allocation5 + $0x594] ss:$8 sps:$4 sm:$0xff]  }
  0xb7   :  { %1798 = vmatmul.mubr.bf16.vlgmr.msra.gmra.mxu0 %v119_v24  ;;  %v2979_v24 = vld [vmem:[#allocation5 + $0x490] ss:$8 sps:$4 sm:$0xff]  }
  0xb8   :  { %1841 = vmatmul.mubr.bf16.vlgmr.msra.gmra.mxu1 %v121_v25  ;;  %1852 = vmatpush1.bf16.msra.mxu0 %v2895_v26  ;;  %v2982_v25 = vld [vmem:[#allocation5 + $0x590] ss:$8 sps:$4 sm:$0xff]   ;;  %v2987_v26 = vld [vmem:[#allocation5 + $0x484] ss:$8 sps:$4 sm:$0xff]  }
  0xb9   :  { %1895 = vmatpush1.bf16.msra.mxu1 %v2898_v27  ;;  %1853 = vmatprep.subr.bf16.mxu0 %v2903_v28  ;;  %v2990_v27 = vld [vmem:[#allocation5 + $0x584] ss:$8 sps:$4 sm:$0xff]   ;;  %v2985_v28 = vld [vmem:[#allocation5 + $0x480] ss:$8 sps:$4 sm:$0xff]  }
  0xba   :  { %1896 = vmatprep.subr.bf16.mxu1 %v2906_v29  ;;  %1883 = vmatprep.mubr.bf16.mxu0 %v124_v36  ;;  %v2988_v29 = vld [vmem:[#allocation5 + $0x580] ss:$8 sps:$4 sm:$0xff]  }
  0xbb   :  { %1926 = vmatprep.mubr.bf16.mxu1 %v126_v41  ;;  %v96_v36 = vld [vmem:[#allocation2 + $0x68] sm:$0xff]  ;;  %v2994_v41 = vld [vmem:[#allocation5 + $0x770] ss:$8 sps:$4 sm:$0xff]  }
  0xbc   :  { %1854 = vmatpush1.bf16.msra.mxu0 %v2901_v30  ;;  %v91_v30 = vld [vmem:[#allocation2 + $0x40] sm:$0xff] }
  0xbd   :  { %1897 = vmatpush1.bf16.msra.mxu1 %v2904_v31  ;;  %1855 = vmatprep.subr.bf16.mxu0 %v2909_v32  ;;  %v107_v31 = vld [vmem:[#allocation2 + $0xc0] sm:$0xff]  ;;  %v93_v32 = vld [vmem:[#allocation2 + $0x50] sm:$0xff] }
  0xbe   :  { %1898 = vmatprep.subr.bf16.mxu1 %v2912_v33  ;;  %v109_v33 = vld [vmem:[#allocation2 + $0xd0] sm:$0xff] }
  0xc0   :  { %1856 = vmatpush1.bf16.msra.mxu0 %v2907_v39  ;;  %v114_v39 = vld [vmem:[#allocation2 + $0xf8] sm:$0xff] }
  0xc1   :  { %1899 = vmatpush1.bf16.msra.mxu1 %v2910_v40  ;;  %1857 = vmatprep.subr.bf16.mxu0 %v2915_v42  ;;  %v2991_v40 = vld [vmem:[#allocation5 + $0x670] ss:$8 sps:$4 sm:$0xff]   ;;  %v123_v42 = vpack.c.bf16 %v107_v31, %v91_v30  ;;  %v3071_v30 = vld [vmem:[#allocation5 + $0x6a4] ss:$8 sps:$4 sm:$0xff]  }
  0xc2   :  { %1900 = vmatprep.subr.bf16.mxu1 %v2918_v43  ;;  %v125_v43 = vpack.c.bf16 %v109_v33, %v93_v32  ;;  %v3074_v31 = vld [vmem:[#allocation5 + $0x7a4] ss:$8 sps:$4 sm:$0xff]   ;;  %v3069_v32 = vld [vmem:[#allocation5 + $0x6a0] ss:$8 sps:$4 sm:$0xff]  }
  0xc3   :  { %v3072_v33 = vld [vmem:[#allocation5 + $0x7a0] ss:$8 sps:$4 sm:$0xff]  }
  0xc4   :  { %1858 = vmatpush1.bf16.msra.mxu0 %v2913_v44  ;;  %v2999_v44 = vld [vmem:[#allocation5 + $0x664] ss:$8 sps:$4 sm:$0xff]  }
  0xc5   :  { %1901 = vmatpush1.bf16.msra.mxu1 %v2916_v45  ;;  %1859 = vmatprep.subr.bf16.mxu0 %v2921_v46  ;;  %v3002_v45 = vld [vmem:[#allocation5 + $0x764] ss:$8 sps:$4 sm:$0xff]   ;;  %v2997_v46 = vld [vmem:[#allocation5 + $0x660] ss:$8 sps:$4 sm:$0xff]  }
  0xc6   :  { %1902 = vmatprep.subr.bf16.mxu1 %v2924_v47  ;;  %v3000_v47 = vld [vmem:[#allocation5 + $0x760] ss:$8 sps:$4 sm:$0xff]  }
  0xc8   :  { %1860 = vmatpush1.bf16.msra.mxu0 %v2919_v48  ;;  %v128_v48 = vpack.c.bf16 %v112_v37, %v96_v36  ;;  %v3075_v36 = vld [vmem:[#allocation5 + $0x690] ss:$8 sps:$4 sm:$0xff]  }
  0xc9   :  { %1903 = vmatpush1.bf16.msra.mxu1 %v2922_v49  ;;  %1861 = vmatprep.subr.bf16.mxu0 %v2927_v50  ;;  %v130_v49 = vpack.c.bf16 %v114_v39, %v98_v38  ;;  %v3005_v50 = vld [vmem:[#allocation5 + $0x654] ss:$8 sps:$4 sm:$0xff]   ;;  %v3078_v37 = vld [vmem:[#allocation5 + $0x790] ss:$8 sps:$4 sm:$0xff]   ;;  %v3083_v38 = vld [vmem:[#allocation5 + $0x684] ss:$8 sps:$4 sm:$0xff]  }
  0xca   :  { %1904 = vmatprep.subr.bf16.mxu1 %v2930_v51  ;;  %v3008_v51 = vld [vmem:[#allocation5 + $0x754] ss:$8 sps:$4 sm:$0xff]   ;;  %v3086_v39 = vld [vmem:[#allocation5 + $0x784] ss:$8 sps:$4 sm:$0xff]  }
  0xcc   :  { %1862 = vmatpush1.bf16.msra.mxu0 %v2925_v52  ;;  %v3003_v52 = vld [vmem:[#allocation5 + $0x650] ss:$8 sps:$4 sm:$0xff]  }
  0xcd   :  { %1905 = vmatpush1.bf16.msra.mxu1 %v2928_v53  ;;  %1863 = vmatprep.subr.bf16.mxu0 %v2933_v54  ;;  %v3006_v53 = vld [vmem:[#allocation5 + $0x750] ss:$8 sps:$4 sm:$0xff]   ;;  %v3011_v54 = vld [vmem:[#allocation5 + $0x644] ss:$8 sps:$4 sm:$0xff]  }
  0xce   :  { %1906 = vmatprep.subr.bf16.mxu1 %v2936_v55  ;;  %v3014_v55 = vld [vmem:[#allocation5 + $0x744] ss:$8 sps:$4 sm:$0xff]  }
  0xd0   :  { %1864 = vmatpush1.bf16.msra.mxu0 %v2931_v56  ;;  %v3009_v56 = vld [vmem:[#allocation5 + $0x640] ss:$8 sps:$4 sm:$0xff]  }
  0xd1   :  { %1907 = vmatpush1.bf16.msra.mxu1 %v2934_v57  ;;  %1865 = vmatprep.subr.bf16.mxu0 %v2939_v58  ;;  %v3012_v57 = vld [vmem:[#allocation5 + $0x740] ss:$8 sps:$4 sm:$0xff]   ;;  %v3017_v58 = vld [vmem:[#allocation5 + $0x634] ss:$8 sps:$4 sm:$0xff]  }
  0xd2   :  { %1908 = vmatprep.subr.bf16.mxu1 %v2942_v59  ;;  %v3020_v59 = vld [vmem:[#allocation5 + $0x734] ss:$8 sps:$4 sm:$0xff]  }
  0xd4   :  { %1866 = vmatpush1.bf16.msra.mxu0 %v2937_v60  ;;  %v3015_v60 = vld [vmem:[#allocation5 + $0x630] ss:$8 sps:$4 sm:$0xff]  }
  0xd5   :  { %1909 = vmatpush1.bf16.msra.mxu1 %v2940_v61  ;;  %1867 = vmatprep.subr.bf16.mxu0 %v2945_v62  ;;  %v3018_v61 = vld [vmem:[#allocation5 + $0x730] ss:$8 sps:$4 sm:$0xff]   ;;  %v3023_v62 = vld [vmem:[#allocation5 + $0x624] ss:$8 sps:$4 sm:$0xff]  }
  0xd6   :  { %1910 = vmatprep.subr.bf16.mxu1 %v2948_v63  ;;  %v3026_v63 = vld [vmem:[#allocation5 + $0x724] ss:$8 sps:$4 sm:$0xff]  }
  0xd8   :  { %1868 = vmatpush2.bf16.msra.mxu0 %v2943_v0  ;;  %v3021_v0 = vld [vmem:[#allocation5 + $0x620] ss:$8 sps:$4 sm:$0xff]  }
  0xd9   :  { %1911 = vmatpush2.bf16.msra.mxu1 %v2946_v1  ;;  %1869 = vmatprep.subr.bf16.mxu0 %v2951_v2  ;;  %v3024_v1 = vld [vmem:[#allocation5 + $0x720] ss:$8 sps:$4 sm:$0xff]   ;;  %v3029_v2 = vld [vmem:[#allocation5 + $0x614] ss:$8 sps:$4 sm:$0xff]  }
  0xda   :  { %1912 = vmatprep.subr.bf16.mxu1 %v2954_v3  ;;  %v3032_v3 = vld [vmem:[#allocation5 + $0x714] ss:$8 sps:$4 sm:$0xff]  }
  0xdc   :  { %1870 = vmatpush2.bf16.msra.mxu0 %v2949_v4  ;;  %v3027_v4 = vld [vmem:[#allocation5 + $0x610] ss:$8 sps:$4 sm:$0xff]  }
  0xdd   :  { %1913 = vmatpush2.bf16.msra.mxu1 %v2952_v5  ;;  %1871 = vmatprep.subr.bf16.mxu0 %v2957_v6  ;;  %v3030_v5 = vld [vmem:[#allocation5 + $0x710] ss:$8 sps:$4 sm:$0xff]   ;;  %v3035_v6 = vld [vmem:[#allocation5 + $0x604] ss:$8 sps:$4 sm:$0xff]  }
  0xde   :  { %1914 = vmatprep.subr.bf16.mxu1 %v2960_v7  ;;  %v3038_v7 = vld [vmem:[#allocation5 + $0x704] ss:$8 sps:$4 sm:$0xff]  }
  0xe0   :  { %1872 = vmatpush2.bf16.msra.mxu0 %v2955_v8  ;;  %v3033_v8 = vld [vmem:[#allocation5 + $0x600] ss:$8 sps:$4 sm:$0xff]  }
  0xe1   :  { %1915 = vmatpush2.bf16.msra.mxu1 %v2958_v9  ;;  %1873 = vmatprep.subr.bf16.mxu0 %v2963_v10  ;;  %v3036_v9 = vld [vmem:[#allocation5 + $0x700] ss:$8 sps:$4 sm:$0xff]   ;;  %v3041_v10 = vld [vmem:[#allocation5 + $0x6f4] ss:$8 sps:$4 sm:$0xff]  }
  0xe2   :  { %1916 = vmatprep.subr.bf16.mxu1 %v2966_v11  ;;  %v3044_v11 = vld [vmem:[#allocation5 + $0x7f4] ss:$8 sps:$4 sm:$0xff]  }
  0xe4   :  { %1874 = vmatpush2.bf16.msra.mxu0 %v2961_v12  ;;  %v3039_v12 = vld [vmem:[#allocation5 + $0x6f0] ss:$8 sps:$4 sm:$0xff]  }
  0xe5   :  { %1917 = vmatpush2.bf16.msra.mxu1 %v2964_v13  ;;  %1875 = vmatprep.subr.bf16.mxu0 %v2969_v14  ;;  %v3042_v13 = vld [vmem:[#allocation5 + $0x7f0] ss:$8 sps:$4 sm:$0xff]   ;;  %v3047_v14 = vld [vmem:[#allocation5 + $0x6e4] ss:$8 sps:$4 sm:$0xff]  }
  0xe6   :  { %1918 = vmatprep.subr.bf16.mxu1 %v2972_v15  ;;  %v3050_v15 = vld [vmem:[#allocation5 + $0x7e4] ss:$8 sps:$4 sm:$0xff]  }
  0xe8   :  { %1876 = vmatpush2.bf16.msra.mxu0 %v2967_v16  ;;  %v3045_v16 = vld [vmem:[#allocation5 + $0x6e0] ss:$8 sps:$4 sm:$0xff]  }
  0xe9   :  { %1919 = vmatpush2.bf16.msra.mxu1 %v2970_v17  ;;  %1877 = vmatprep.subr.bf16.mxu0 %v2975_v18  ;;  %v3048_v17 = vld [vmem:[#allocation5 + $0x7e0] ss:$8 sps:$4 sm:$0xff]   ;;  %v3053_v18 = vld [vmem:[#allocation5 + $0x6d4] ss:$8 sps:$4 sm:$0xff]  }
  0xea   :  { %1920 = vmatprep.subr.bf16.mxu1 %v2978_v19  ;;  %v3056_v19 = vld [vmem:[#allocation5 + $0x7d4] ss:$8 sps:$4 sm:$0xff]  }
  0xec   :  { %1878 = vmatpush2.bf16.msra.mxu0 %v2973_v20  ;;  %v3051_v20 = vld [vmem:[#allocation5 + $0x6d0] ss:$8 sps:$4 sm:$0xff]  }
  0xed   :  { %1921 = vmatpush2.bf16.msra.mxu1 %v2976_v21  ;;  %1879 = vmatprep.subr.bf16.mxu0 %v2981_v22  ;;  %v3054_v21 = vld [vmem:[#allocation5 + $0x7d0] ss:$8 sps:$4 sm:$0xff]   ;;  %v3059_v22 = vld [vmem:[#allocation5 + $0x6c4] ss:$8 sps:$4 sm:$0xff]  }
  0xee   :  { %1922 = vmatprep.subr.bf16.mxu1 %v2984_v23  ;;  %v3062_v23 = vld [vmem:[#allocation5 + $0x7c4] ss:$8 sps:$4 sm:$0xff]  }
  0xf0   :  { %1880 = vmatpush2.bf16.msra.mxu0 %v2979_v24  ;;  %v3057_v24 = vld [vmem:[#allocation5 + $0x6c0] ss:$8 sps:$4 sm:$0xff]  }
  0xf1   :  { %1923 = vmatpush2.bf16.msra.mxu1 %v2982_v25  ;;  %1881 = vmatprep.subr.bf16.mxu0 %v2987_v26  ;;  %v3060_v25 = vld [vmem:[#allocation5 + $0x7c0] ss:$8 sps:$4 sm:$0xff]   ;;  %v3065_v26 = vld [vmem:[#allocation5 + $0x6b4] ss:$8 sps:$4 sm:$0xff]  }
  0xf2   :  { %1924 = vmatprep.subr.bf16.mxu1 %v2990_v27  ;;  %v3068_v27 = vld [vmem:[#allocation5 + $0x7b4] ss:$8 sps:$4 sm:$0xff]  }
  0xf4   :  { %1882 = vmatpush2.bf16.msra.mxu0 %v2985_v28  ;;  %v3063_v28 = vld [vmem:[#allocation5 + $0x6b0] ss:$8 sps:$4 sm:$0xff]  }
  0xf5   :  { %1925 = vmatpush2.bf16.msra.mxu1 %v2988_v29  ;;  %1937 = vmatprep.subr.bf16.mxu0 %v2993_v34  ;;  %v3066_v29 = vld [vmem:[#allocation5 + $0x7b0] ss:$8 sps:$4 sm:$0xff]   ;;  %v3077_v34 = vld [vmem:[#allocation5 + $0x694] ss:$8 sps:$4 sm:$0xff]  }
  0xf6   :  { %1980 = vmatprep.subr.bf16.mxu1 %v2996_v35  ;;  %v3080_v35 = vld [vmem:[#allocation5 + $0x794] ss:$8 sps:$4 sm:$0xff]  }
  0xf7   :  { %1884 = vmatmul.mubr.bf16.vlgmr.msra.gmra.mxu0 %v123_v42  ;;  %v95_v42 = vld [vmem:[#allocation2 + $0x60] sm:$0xff] }
  0xf8   :  { %1927 = vmatmul.mubr.bf16.vlgmr.msra.gmra.mxu1 %v125_v43  ;;  %1938 = vmatpush1.bf16.msra.mxu0 %v2991_v40  ;;  %v3081_v40 = vld [vmem:[#allocation5 + $0x680] ss:$8 sps:$4 sm:$0xff]  }
  0xf9   :  { %1981 = vmatpush1.bf16.msra.mxu1 %v2994_v41  ;;  %1939 = vmatprep.subr.bf16.mxu0 %v2999_v44  ;;  %v3084_v41 = vld [vmem:[#allocation5 + $0x780] ss:$8 sps:$4 sm:$0xff]   ;;  %v97_v44 = vld [vmem:[#allocation2 + $0x70] sm:$0xff] }
  0xfa   :  { %1982 = vmatprep.subr.bf16.mxu1 %v3002_v45  ;;  %1969 = vmatprep.mubr.bf16.mxu0 %v128_v48  ;;  %v111_v43 = vld [vmem:[#allocation2 + $0xe0] sm:$0xff]  ;;  %v113_v45 = vld [vmem:[#allocation2 + $0xf0] sm:$0xff]  ;;  %v3087_v48 = vld [vmem:[#allocation7 + $0x78] sm:$0xff]  }
  0xfb   :  { %2012 = vmatprep.mubr.bf16.mxu1 %v130_v49  ;;  %v3088_v49 = vld [vmem:[#allocation7 + $0x38] sm:$0xff]  }
  0xfc   :  { %1940 = vmatpush1.bf16.msra.mxu0 %v2997_v46  ;;  %v127_v46 = vpack.c.bf16 %v111_v43, %v95_v42 }
  0xfd   :  { %1983 = vmatpush1.bf16.msra.mxu1 %v3000_v47  ;;  %1941 = vmatprep.subr.bf16.mxu0 %v3005_v50  ;;  %v129_v47 = vpack.c.bf16 %v113_v45, %v97_v44  ;;  %v3089_v50 = vld [vmem:[#allocation7 + $0x70] sm:$0xff]  }
  0xfe   :  { %1984 = vmatprep.subr.bf16.mxu1 %v3008_v51  ;;  %v3090_v51 = vld [vmem:[#allocation7 + $0x30] sm:$0xff]  }
 0x100   :  { %1942 = vmatpush1.bf16.msra.mxu0 %v3003_v52  ;;  %v3091_v52 = vld [vmem:[#allocation7 + $0x68] sm:$0xff]  }
 0x101   :  { %1985 = vmatpush1.bf16.msra.mxu1 %v3006_v53  ;;  %1943 = vmatprep.subr.bf16.mxu0 %v3011_v54  ;;  %v3092_v53 = vld [vmem:[#allocation7 + $0x28] sm:$0xff]   ;;  %v3093_v54 = vld [vmem:[#allocation7 + $0x60] sm:$0xff]  }
 0x102   :  { %1986 = vmatprep.subr.bf16.mxu1 %v3014_v55  ;;  %v3094_v55 = vld [vmem:[#allocation7 + $0x20] sm:$0xff]  }
 0x104   :  { %1944 = vmatpush1.bf16.msra.mxu0 %v3009_v56  ;;  %v3095_v56 = vld [vmem:[#allocation7 + $0x58] sm:$0xff]  }
 0x105   :  { %1987 = vmatpush1.bf16.msra.mxu1 %v3012_v57  ;;  %1945 = vmatprep.subr.bf16.mxu0 %v3017_v58  ;;  %v3096_v57 = vld [vmem:[#allocation7 + $0x18] sm:$0xff]   ;;  %v3097_v58 = vld [vmem:[#allocation7 + $0x50] sm:$0xff]  }
 0x106   :  { %1988 = vmatprep.subr.bf16.mxu1 %v3020_v59  ;;  %v3098_v59 = vld [vmem:[#allocation7 + $0x10] sm:$0xff]  }
 0x108   :  { %1946 = vmatpush1.bf16.msra.mxu0 %v3015_v60  ;;  %v3099_v60 = vld [vmem:[#allocation7 + $0x48] sm:$0xff]  }
 0x109   :  { %1989 = vmatpush1.bf16.msra.mxu1 %v3018_v61  ;;  %1947 = vmatprep.subr.bf16.mxu0 %v3023_v62  ;;  %v3100_v61 = vld [vmem:[#allocation7 + $0x8] sm:$0xff]   ;;  %v3101_v62 = vld [vmem:[#allocation7 + $0x40] sm:$0xff]  }
 0x10a   :  { %1990 = vmatprep.subr.bf16.mxu1 %v3026_v63  ;;  %v3102_v63 = vld [vmem:[#allocation7] sm:$0xff]  }
 0x10c   :  { %1948 = vmatpush1.bf16.msra.mxu0 %v3021_v0  ;;  %v3103_v0 = vld [vmem:[#allocation8 + $0x38] sm:$0xff]  }
 0x10d   :  { %1991 = vmatpush1.bf16.msra.mxu1 %v3024_v1  ;;  %1949 = vmatprep.subr.bf16.mxu0 %v3029_v2  ;;  %v3228_v1 = vmov 0.0   ;;  %v3104_v2 = vld [vmem:[#allocation8 + $0x30] sm:$0xff]  }
 0x10e   :  { %1992 = vmatprep.subr.bf16.mxu1 %v3032_v3  ;;  %v3105_v3 = vld [vmem:[#allocation8 + $0x28] sm:$0xff]  }
 0x110   :  { %1950 = vmatpush1.bf16.msra.mxu0 %v3027_v4  ;;  %v3106_v4 = vld [vmem:[#allocation8 + $0x20] sm:$0xff]  }
 0x111   :  { %1993 = vmatpush1.bf16.msra.mxu1 %v3030_v5  ;;  %1951 = vmatprep.subr.bf16.mxu0 %v3035_v6 }
 0x112   :  { %1994 = vmatprep.subr.bf16.mxu1 %v3038_v7 }
 0x114   :  { %1952 = vmatpush1.bf16.msra.mxu0 %v3033_v8 }
 0x115   :  { %1995 = vmatpush1.bf16.msra.mxu1 %v3036_v9  ;;  %1953 = vmatprep.subr.bf16.mxu0 %v3041_v10 }
 0x116   :  { %1996 = vmatprep.subr.bf16.mxu1 %v3044_v11  ;;  %v389_v11 = vlaneseq }
 0x118   :  { %1954 = vmatpush2.bf16.msra.mxu0 %v3039_v12 }
 0x119   :  { %1997 = vmatpush2.bf16.msra.mxu1 %v3042_v13  ;;  %1955 = vmatprep.subr.bf16.mxu0 %v3047_v14 }
 0x11a   :  { %1998 = vmatprep.subr.bf16.mxu1 %v3050_v15 }
 0x11c   :  { %1956 = vmatpush2.bf16.msra.mxu0 %v3045_v16  ;;  %v390_v16 = vshrl.u32 %v389_v11, 7 }
 0x11d   :  { %1999 = vmatpush2.bf16.msra.mxu1 %v3048_v17  ;;  %1957 = vmatprep.subr.bf16.mxu0 %v3053_v18 }
 0x11e   :  { %2000 = vmatprep.subr.bf16.mxu1 %v3056_v19  ;;  %v395_v19 = vsub.s32 1, %v390_v16 }
 0x120   :  { %1958 = vmatpush2.bf16.msra.mxu0 %v3051_v20  ;;  %v387_v20 = vld [vmem:[%s3315_s2] sm:$0x3] }
 0x121   :  { %2001 = vmatpush2.bf16.msra.mxu1 %v3054_v21  ;;  %1959 = vmatprep.subr.bf16.mxu0 %v3059_v22  ;;  %v391_v21 = vsub.s32 0, %v390_v16 }
 0x122   :  { %2002 = vmatprep.subr.bf16.mxu1 %v3062_v23 }
 0x124   :  { %1960 = vmatpush2.bf16.msra.mxu0 %v3057_v24  ;;  %v396_v24 = vrot.slane %v387_v20, %v395_v19  ;;  %v3107_v19 = vld [vmem:[#allocation8 + $0x18] sm:$0xff]  }
 0x125   :  { %2003 = vmatpush2.bf16.msra.mxu1 %v3060_v25  ;;  %1961 = vmatprep.subr.bf16.mxu0 %v3065_v26  ;;  %v392_v25 = vrot.slane %v387_v20, %v391_v21  ;;  %v3108_v20 = vld [vmem:[#allocation8 + $0x10] sm:$0xff]   ;;  %v3109_v21 = vld [vmem:[#allocation8 + $0x8] sm:$0xff]  }
 0x126   :  { %2004 = vmatprep.subr.bf16.mxu1 %v3068_v27 }
 0x128   :  { %1962 = vmatpush2.bf16.msra.mxu0 %v3063_v28 }
 0x129   :  { %2005 = vmatpush2.bf16.msra.mxu1 %v3066_v29  ;;  %1963 = vmatprep.subr.bf16.mxu0 %v3071_v30 }
 0x12a   :  { %2006 = vmatprep.subr.bf16.mxu1 %v3074_v31 }
 0x12c   :  { %1964 = vmatpush2.bf16.msra.mxu0 %v3069_v32 }
 0x12d   :  { %2007 = vmatpush2.bf16.msra.mxu1 %v3072_v33  ;;  %1965 = vmatprep.subr.bf16.mxu0 %v3077_v34 }
 0x12e   :  { %2008 = vmatprep.subr.bf16.mxu1 %v3080_v35 }
 0x130   :  { %1966 = vmatpush2.bf16.msra.mxu0 %v3075_v36 }
 0x131   :  { %2009 = vmatpush2.bf16.msra.mxu1 %v3078_v37  ;;  %1967 = vmatprep.subr.bf16.mxu0 %v3083_v38 }
 0x132   :  { %2010 = vmatprep.subr.bf16.mxu1 %v3086_v39 }
 0x134   :  { %1968 = vmatpush2.bf16.msra.mxu0 %v3081_v40 }
 0x135   :  { %2011 = vmatpush2.bf16.msra.mxu1 %v3084_v41  ;;  %2640 = vmatprep.subr.bf16.mxu0 %v3087_v48 }
 0x136   :  { %2671 = vmatprep.subr.bf16.mxu1 %v3228_v1 }
 0x137   :  { %1970 = vmatmul.mubr.bf16.vlgmr.msra.gmra.mxu0 %v127_v46  ;;  %v1713_v5 = vpop.f32.mrf.mxu0 }
 0x138   :  { %2013 = vmatmul.mubr.bf16.vlgmr.msra.gmra.mxu1 %v129_v47  ;;  %2641 = vmatpush3.bf16.msra.mxu0 %v3088_v49  ;;  %v1756_v6 = vpop.f32.mrf.mxu1  ;;  %v1714_v29 = vadd.f32 %v1713_v5, %v392_v25 }
 0x139   :  { %2642 = vmatprep.subr.bf16.mxu0 %v3089_v50  ;;  %2672 = vmatpush3.bf16.msra.mxu1 %v3103_v0  ;;  %v1715_v7 = vpop.f32.mrf.mxu0 }
 0x13a   :  { %2673 = vmatprep.subr.bf16.mxu1 %v3228_v1  ;;  %v1758_v8 = vpop.f32.mrf.mxu1  ;;  %v1716_v28 = vadd.f32 %v1715_v7, %v396_v24  ;;  %v1757_v35 = vadd.f32 %v1756_v6, %v1714_v29  ;;  %2687 = vmatprep.mubr.msk.bf16.mxu1 %vm3229_vm0, %v3228_v1 }
 0x13b   :  { %v1717_v9 = vpop.f32.mrf.mxu0 }
 0x13c   :  { %2643 = vmatpush3.bf16.msra.mxu0 %v3090_v51  ;;  %v1760_v10 = vpop.f32.mrf.mxu1  ;;  %v1718_v32 = vadd.f32 %v1717_v9, %v392_v25  ;;  %v1759_v33 = vadd.f32 %v1758_v8, %v1716_v28 }
 0x13d   :  { %2644 = vmatprep.subr.bf16.mxu0 %v3091_v52  ;;  %2674 = vmatpush3.bf16.msra.mxu1 %v3104_v2  ;;  %v1719_v12 = vpop.f32.mrf.mxu0 }
 0x13e   :  { %2675 = vmatprep.subr.bf16.mxu1 %v3228_v1  ;;  %v1762_v13 = vpop.f32.mrf.mxu1  ;;  %v1720_v34 = vadd.f32 %v1719_v12, %v396_v24  ;;  %v1761_v38 = vadd.f32 %v1760_v10, %v1718_v32 }
 0x140   :  { %2645 = vmatpush3.bf16.msra.mxu0 %v3092_v53  ;;  %v1763_v41 = vadd.f32 %v1762_v13, %v1720_v34 }
 0x141   :  { %2646 = vmatprep.subr.bf16.mxu0 %v3093_v54  ;;  %2676 = vmatpush3.bf16.msra.mxu1 %v3105_v3 }
 0x142   :  { %2677 = vmatprep.subr.bf16.mxu1 %v3228_v1 }
 0x144   :  { %2647 = vmatpush3.bf16.msra.mxu0 %v3094_v55 }
 0x145   :  { %2648 = vmatprep.subr.bf16.mxu0 %v3095_v56  ;;  %2678 = vmatpush3.bf16.msra.mxu1 %v3106_v4 }
 0x146   :  { %2679 = vmatprep.subr.bf16.mxu1 %v3228_v1 }
 0x148   :  { %2649 = vmatpush3.bf16.msra.mxu0 %v3096_v57 }
 0x149   :  { %2650 = vmatprep.subr.bf16.mxu0 %v3097_v58  ;;  %2680 = vmatpush3.bf16.msra.mxu1 %v3107_v19 }
 0x14a   :  { %2681 = vmatprep.subr.bf16.mxu1 %v3228_v1 }
 0x14c   :  { %2651 = vmatpush3.bf16.msra.mxu0 %v3098_v59 }
 0x14d   :  { %2652 = vmatprep.subr.bf16.mxu0 %v3099_v60  ;;  %2682 = vmatpush3.bf16.msra.mxu1 %v3108_v20 }
 0x14e   :  { %2683 = vmatprep.subr.bf16.mxu1 %v3228_v1 }
 0x150   :  { %2653 = vmatpush3.bf16.msra.mxu0 %v3100_v61 }
 0x151   :  { %2654 = vmatprep.subr.bf16.mxu0 %v3101_v62  ;;  %2684 = vmatpush3.bf16.msra.mxu1 %v3109_v21 }
 0x152   :  { %2685 = vmatprep.subr.bf16.mxu1 %v3228_v1  ;;  %v2622_v1 = vld [vmem:[%s3319_s6] ss:$0 sm:$0xff] }
 0x154   :  { %2655 = vmatpush3.bf16.msra.mxu0 %v3102_v63 }
 0x177   :  { %v1799_v14 = vpop.f32.mrf.mxu0 }
 0x178   :  { %v1842_v15 = vpop.f32.mrf.mxu1  ;;  %v1800_v40 = vadd.f32 %v1799_v14, %v1757_v35 }
 0x179   :  { %v1801_v17 = vpop.f32.mrf.mxu0 }
 0x17a   :  { %v1844_v18 = vpop.f32.mrf.mxu1  ;;  %v1802_v39 = vadd.f32 %v1801_v17, %v1759_v33  ;;  %v1843_v47 = vadd.f32 %v1842_v15, %v1800_v40 }
 0x17b   :  { %v1803_v22 = vpop.f32.mrf.mxu0 }
 0x17c   :  { %v1846_v23 = vpop.f32.mrf.mxu1  ;;  %v1804_v42 = vadd.f32 %v1803_v22, %v1761_v38  ;;  %v1845_v45 = vadd.f32 %v1844_v18, %v1802_v39  ;;  %v3110_v22 = vld [vmem:[#allocation8] sm:$0xff]  }
 0x17d   :  { %v1805_v26 = vpop.f32.mrf.mxu0  ;;  %2686 = vmatpush3.bf16.msra.mxu1 %v3110_v22 }
 0x17e   :  { %v1848_v27 = vpop.f32.mrf.mxu1  ;;  %v1806_v46 = vadd.f32 %v1805_v26, %v1763_v41  ;;  %v1847_v48 = vadd.f32 %v1846_v23, %v1804_v42  ;;  %v2605_v26 = vld [vmem:[%s3317_s4] ss:$0 sm:$0xff]  ;;  %s3191_s4 = scalar_lea.vmem %s2336_s28, 128 }
 0x17f   :  { %p3192_p6 = scmp.ne.s32.totalorder %s2336_s28, %s3191_s4  ;;  %p3197_p8 = scmp.lt.s32.totalorder %s3191_s4, %s3191_s4 }
 0x180   :  { %v1849_v53 = vadd.f32 %v1848_v27, %v1806_v46 }
 0x181   :  { %p3198_p9 = por %p3197_p8, %p3196_p7 }
 0x183   :  { %p3199_p10 = pnand %p3198_p9, %p3192_p6 }
 0x1b7   :  { %v1885_v30 = vpop.f32.mrf.mxu0 }
 0x1b8   :  { %v1928_v31 = vpop.f32.mrf.mxu1  ;;  %v1886_v50 = vadd.f32 %v1885_v30, %v1843_v47 }
 0x1b9   :  { %v1887_v36 = vpop.f32.mrf.mxu0 }
 0x1ba   :  { %v1930_v37 = vpop.f32.mrf.mxu1  ;;  %v1888_v49 = vadd.f32 %v1887_v36, %v1845_v45  ;;  %v1929_v59 = vadd.f32 %v1928_v31, %v1886_v50 }
 0x1bb   :  { %v1889_v43 = vpop.f32.mrf.mxu0 }
 0x1bc   :  { %v1932_v44 = vpop.f32.mrf.mxu1  ;;  %v1890_v54 = vadd.f32 %v1889_v43, %v1847_v48  ;;  %v1931_v57 = vadd.f32 %v1930_v37, %v1888_v49 }
 0x1bd   :  { %v1891_v51 = vpop.f32.mrf.mxu0 }
 0x1be   :  { %v1934_v52 = vpop.f32.mrf.mxu1  ;;  %v1892_v58 = vadd.f32 %v1891_v51, %v1849_v53  ;;  %v1933_v62 = vadd.f32 %v1932_v44, %v1890_v54 }
 0x1c0   :  { %v1935_v4 = vadd.f32 %v1934_v52, %v1892_v58 }
 0x1f7   :  { %v1971_v55 = vpop.f32.mrf.mxu0 }
 0x1f8   :  { %v2014_v56 = vpop.f32.mrf.mxu1  ;;  %v1972_v0 = vadd.f32 %v1971_v55, %v1929_v59 }
 0x1f9   :  { %v1973_v60 = vpop.f32.mrf.mxu0 }
 0x1fa   :  { %v2016_v61 = vpop.f32.mrf.mxu1  ;;  %v1974_v63 = vadd.f32 %v1973_v60, %v1931_v57  ;;  %v2015_v10 = vadd.f32 %v2014_v56, %v1972_v0 }
 0x1fb   :  { %v1975_v2 = vpop.f32.mrf.mxu0 }
 0x1fc   :  { %v2018_v3 = vpop.f32.mrf.mxu1  ;;  %v1976_v5 = vadd.f32 %v1975_v2, %v1933_v62  ;;  %v2017_v7 = vadd.f32 %v2016_v61, %v1974_v63  ;;  %v2023_v16 = vmax.f32 %v2015_v10, 0.0 }
 0x1fd   :  { %v1977_v6 = vpop.f32.mrf.mxu0 }
 0x1fe   :  { %v2019_v8 = vadd.f32 %v2018_v3, %v1976_v5  ;;  %v1978_v9 = vadd.f32 %v1977_v6, %v1935_v4  ;;  %v2020_v11 = vpop.f32.mrf.mxu1  ;;  %v2024_v14 = vmax.f32 %v2017_v7, 0.0 }
 0x200   :  { %v2021_v12 = vadd.f32 %v2020_v11, %v1978_v9  ;;  %v2025_v13 = vmax.f32 %v2019_v8, 0.0 }
 0x202   :  { %v2026_v15 = vmax.f32 %v2021_v12, 0.0  ;;  %v2027_v18 = vpack.c.bf16 %v2025_v13, %v2023_v16 }
 0x204   :  { %v2028_v17 = vpack.c.bf16 %v2026_v15, %v2024_v14 }
 0x206   :  { %2196 = vmatprep.mubr.bf16.mxu0 %v2028_v17 }
 0x207   :  { %2197 = vmatmul.mubr.bf16.vlgmr.msra.gmra.mxu0 %v2027_v18 }
 0x2c7   :  { %v2656_v23 = vpop.f32.mrf.mxu0 }
 0x2c9   :  { %v2657_v24 = vpop.f32.mrf.mxu0 }
 0x2ca   :  { %v2658_v25 = vadd.f32 %v2657_v24, %v2656_v23 }
 0x2cb   :  { %v2659_v27 = vpop.f32.mrf.mxu0 }
 0x2cc   :  { %v2199_v29 = vadd.f32 %v2658_v25, %v2605_v26 }
 0x2cd   :  { %v2660_v28 = vpop.f32.mrf.mxu0 }
 0x2ce   :  { %v2661_v30 = vadd.f32 %v2660_v28, %v2659_v27  ;;  %v2205_v32 = vmax.f32 %v2199_v29, 0.0 }
 0x2d0   :  { %v2202_v31 = vadd.f32 %v2661_v30, %v2605_v26 }
 0x2d2   :  { %v2206_v33 = vmax.f32 %v2202_v31, 0.0 }
 0x2d4   :  { %v2207_v34 = vpack.c.bf16 %v2206_v33, %v2205_v32 }
 0x2d6   :  { %2688 = vmatmul.mubr.bf16.vlgmr.msra.gmra.mxu1 %v2207_v34 }
 0x396   :  { %v2313_v35 = vpop.f32.mrf.mxu1 }
 0x397   :  { %v2314_v38 = vadd.f32 %v2622_v1, %v2313_v35 }
 0x398   :  { %v2689_v36 = vpop.f32.mrf.mxu1 }
 0x39a   :  { %v2316_v37 = vpop.f32.mrf.mxu1 }
 0x39b   :  { %v2317_v39 = vadd.f32 %v2622_v1, %v2316_v37 }
 0x39c   :  { %v2690_v40 = vpop.f32.mrf.mxu1 }
 0x39d   :  { %v2638_v41 = vpack.c.bf16 %v2317_v39, %v2314_v38 }
 0x39f   :  { %2639 = vst [vmem:[#allocation10] sm:$0xff] %v2638_v41  }
 0x3a0   :  { %3202 = shalt.err (!%p3199_p10)
}
 0x3a1   :  { %2341 = dma.vmem_to_hbm [thread:$0]  %s2336_s28, 128, %s3320_s7, [#allocation4], %s3225_s1, %s3225_s1, %s3226_s17  }
 0x3a2   :  { %3217 = dma.done.wait [#allocation4], 128  }
 0x3a3   :  { %3218 = vsyncadd [#allocation4], 4294967168 }
 0x3a4   :  { %2345 = vsyncpa [#allocation3], 1 }
 0x3a5   :  { %2346 = vsyncpa [#allocation6], 1 }
 0x3a6   :  { %2347 = vsyncpa [#allocation9], 1 }
 0x3a7   :  { %2348 = vsyncpa [#allocation4], 1 }

</bundles_post_ra>
